<compile_context>
chip_gen: v6e
topology: v6e:2x2x1
jax: 0.10.0
libtpu: 0.0.40
codegen_flags: <defaults>
</compile_context>

<pallas_src>
import math

import jax
import jax.numpy as jnp
from jax.experimental import pallas as pl
from jax.experimental.pallas import tpu as pltpu

MAX_PERIOD = 10000.0


def _round_up(x, m):
    return ((x + m - 1) // m) * m


def _action_embedder_kernel(xya_ref, freqs_ref, *refs):
    """Fused forward for the three TimestepEmbedders of an ActionEmbedder.

    xya_ref  : (TN, 3) f32 block of [x, y, angle] rows.
    freqs_ref: (1, half) f32 precomputed frequency table (shared).
    refs     : 5 weight refs per component (w1_cos, w1_sin, b1, w2, b2),
               followed by the (TN, hidden_total) f32 output ref.
    """
    *w_refs, o_ref = refs
    n_comp = len(w_refs) // 5
    freqs = freqs_ref[...]                              # (1, half)

    outs = []
    for c in range(n_comp):
        w1c_ref, w1s_ref, b1_ref, w2_ref, b2_ref = w_refs[5 * c:5 * c + 5]
        t = xya_ref[:, c:c + 1]                         # (TN, 1)
        args = t * freqs                                # (TN, half)
        # Linear 1 on concat([cos, sin]) WITHOUT materializing the concat:
        #   emb @ W1 == cos(args) @ W1[:half] + sin(args) @ W1[half:]
        h = (jnp.dot(jnp.cos(args), w1c_ref[...],
                     preferred_element_type=jnp.float32)
             + jnp.dot(jnp.sin(args), w1s_ref[...],
                       preferred_element_type=jnp.float32)
             + b1_ref[...])
        h = h * jax.nn.sigmoid(h)                       # SiLU (f32, VPU/EUP)
        outs.append(jnp.dot(h, w2_ref[...],
                            preferred_element_type=jnp.float32) + b2_ref[...])

    # One lane-concatenated store per block.  (hidden_total < 128 here, so the
    # store is masked; at very large N a lane-dense output repack could be
    # considered, but it is irrelevant at these widths.)
    o_ref[...] = jnp.concatenate(outs, axis=-1).astype(o_ref.dtype)


def action_embedder(xya, params, *, frequency_embedding_size=256, block_n=512):
    """xya: (..., 3) float; params: list of 3 dicts with w1 (F, h_i), b1 (h_i,),
    w2 (h_i, h_i), b2 (h_i,).  Returns (..., sum(h_i)) float32."""
    assert frequency_embedding_size % 2 == 0, "odd freq_dim not supported"
    assert xya.shape[-1] == 3
    half = frequency_embedding_size // 2

    lead_shape = xya.shape[:-1]
    n = math.prod(lead_shape)
    xya2 = xya.reshape(n, 3).astype(jnp.float32)

    hidden_sizes = [int(p["w2"].shape[1]) for p in params]
    hidden_total = sum(hidden_sizes)

    # Row tiling: big blocks for realistic N (DMA pipelining), clamped for tiny N.
    block_n = max(8, _round_up(min(int(block_n), max(n, 1)), 8))
    n_pad = _round_up(n, block_n)
    if n_pad != n:
        xya2 = jnp.pad(xya2, ((0, n_pad - n), (0, 0)))

    # Precomputed frequency table, shared by all three sub-embedders.
    freqs = jnp.exp(
        -math.log(MAX_PERIOD) * jnp.arange(half, dtype=jnp.float32) / half
    ).reshape(1, half)

    weight_args = []
    weight_specs = []
    for p in params:
        w1 = p["w1"].astype(jnp.float32)
        w1c, w1s = w1[:half], w1[half:]                 # split once, no concat in kernel
        b1 = p["b1"].astype(jnp.float32).reshape(1, -1)
        w2 = p["w2"].astype(jnp.float32)
        b2 = p["b2"].astype(jnp.float32).reshape(1, -1)
        for a in (w1c, w1s, b1, w2, b2):
            weight_args.append(a)
            weight_specs.append(pl.BlockSpec(a.shape, lambda i: (0, 0)))

    grid = (n_pad // block_n,)
    out = pl.pallas_call(
        _action_embedder_kernel,
        out_shape=jax.ShapeDtypeStruct((n_pad, hidden_total), jnp.float32),
        grid_spec=pltpu.PrefetchScalarGridSpec(
            num_scalar_prefetch=0,
            grid=grid,
            in_specs=[
                pl.BlockSpec((block_n, 3), lambda i: (i, 0)),     # xya rows
                pl.BlockSpec((1, half), lambda i: (0, 0)),        # freqs
            ] + weight_specs,
            out_specs=pl.BlockSpec((block_n, hidden_total), lambda i: (i, 0)),
        ),
        compiler_params=pltpu.CompilerParams(
            dimension_semantics=("parallel",)),
    )(xya2, freqs, *weight_args)

    return out[:n].reshape(*lead_shape, hidden_total)


def reference(xya, params, frequency_embedding_size=256):
    """Pure-JAX replica of the PyTorch ActionEmbedder forward."""
    half = frequency_embedding_size // 2
    freqs = jnp.exp(
        -math.log(MAX_PERIOD) * jnp.arange(half, dtype=jnp.float32) / half)
    outs = []
    for c, p in enumerate(params):
        t = xya[..., c:c + 1].astype(jnp.float32)       # (..., 1)
        args = t * freqs[None]
        emb = jnp.concatenate([jnp.cos(args), jnp.sin(args)], axis=-1)
        h = emb @ p["w1"] + p["b1"]
        h = h * jax.nn.sigmoid(h)
        outs.append(h @ p["w2"] + p["b2"])
    return jnp.concatenate(outs, axis=-1)


if __name__ == "__main__":
    hidden_size = 96                      # -> per-component sizes 32, 32, 32
    frequency_embedding_size = 256
    batch, seq = 2, 8                     # xya: (2, 8, 3)

    hsize = hidden_size // 3
    hidden_sizes = [hsize, hsize, hidden_size - 2 * hsize]

    keys = jax.random.split(jax.random.PRNGKey(0), 1 + 4 * 3)
    xya = jax.random.uniform(keys[0], (batch, seq, 3), jnp.float32,
                             minval=-3.0, maxval=3.0)

    params = []
    kidx = 1
    for h in hidden_sizes:
        kw1, kb1, kw2, kb2 = keys[kidx:kidx + 4]
        kidx += 4
        params.append(dict(
            w1=jax.random.normal(kw1, (frequency_embedding_size, h), jnp.float32) * 0.02,
            b1=jax.random.normal(kb1, (h,), jnp.float32) * 0.02,
            w2=jax.random.normal(kw2, (h, h), jnp.float32) * 0.02,
            b2=jax.random.normal(kb2, (h,), jnp.float32) * 0.02,
        ))

    # block_n=8 -> 2-step grid at this tiny size (exercises the pipelined path);
    # for real workloads leave the default block_n=512.
    out = action_embedder(xya, params,
                          frequency_embedding_size=frequency_embedding_size,
                          block_n=8)
    out = jax.block_until_ready(out)

    ref = reference(xya, params, frequency_embedding_size)
    assert out.shape == (batch, seq, hidden_size), out.shape
    assert jnp.allclose(out, ref, atol=1e-4, rtol=1e-4), "mismatch vs reference"

    print("KERNEL_OK")
</pallas_src>

<mosaic_0001>
module attributes {stable_mosaic.version = 11 : i64} {
  func.func @_action_embedder_kernel(%arg0: i32, %arg1: memref<8x3xf32, #tpu.memory_space<vmem>>, %arg2: memref<1x128xf32, #tpu.memory_space<vmem>>, %arg3: memref<128x32xf32, #tpu.memory_space<vmem>>, %arg4: memref<128x32xf32, #tpu.memory_space<vmem>>, %arg5: memref<1x32xf32, #tpu.memory_space<vmem>>, %arg6: memref<32x32xf32, #tpu.memory_space<vmem>>, %arg7: memref<1x32xf32, #tpu.memory_space<vmem>>, %arg8: memref<128x32xf32, #tpu.memory_space<vmem>>, %arg9: memref<128x32xf32, #tpu.memory_space<vmem>>, %arg10: memref<1x32xf32, #tpu.memory_space<vmem>>, %arg11: memref<32x32xf32, #tpu.memory_space<vmem>>, %arg12: memref<1x32xf32, #tpu.memory_space<vmem>>, %arg13: memref<128x32xf32, #tpu.memory_space<vmem>>, %arg14: memref<128x32xf32, #tpu.memory_space<vmem>>, %arg15: memref<1x32xf32, #tpu.memory_space<vmem>>, %arg16: memref<32x32xf32, #tpu.memory_space<vmem>>, %arg17: memref<1x32xf32, #tpu.memory_space<vmem>>, %arg18: memref<8x96xf32, #tpu.memory_space<vmem>>) attributes {dimension_semantics = [#tpu.dimension_semantics<parallel>], iteration_bounds = array<i64: 2>, scalar_prefetch = 0 : i64, scratch_operands = 0 : i64, tpu.core_type = #tpu.core_type<tc>, window_params = [{transform_indices = @transform_0, window_bounds = array<i64: 8, 3>}, {pipeline_mode = #tpu.pipeline_mode<synchronous>, transform_indices = @transform_1, window_bounds = array<i64: 1, 128>}, {pipeline_mode = #tpu.pipeline_mode<synchronous>, transform_indices = @transform_2, window_bounds = array<i64: 128, 32>}, {pipeline_mode = #tpu.pipeline_mode<synchronous>, transform_indices = @transform_3, window_bounds = array<i64: 128, 32>}, {pipeline_mode = #tpu.pipeline_mode<synchronous>, transform_indices = @transform_4, window_bounds = array<i64: 1, 32>}, {pipeline_mode = #tpu.pipeline_mode<synchronous>, transform_indices = @transform_5, window_bounds = array<i64: 32, 32>}, {pipeline_mode = #tpu.pipeline_mode<synchronous>, transform_indices = @transform_6, window_bounds = array<i64: 1, 32>}, {pipeline_mode = #tpu.pipeline_mode<synchronous>, transform_indices = @transform_7, window_bounds = array<i64: 128, 32>}, {pipeline_mode = #tpu.pipeline_mode<synchronous>, transform_indices = @transform_8, window_bounds = array<i64: 128, 32>}, {pipeline_mode = #tpu.pipeline_mode<synchronous>, transform_indices = @transform_9, window_bounds = array<i64: 1, 32>}, {pipeline_mode = #tpu.pipeline_mode<synchronous>, transform_indices = @transform_10, window_bounds = array<i64: 32, 32>}, {pipeline_mode = #tpu.pipeline_mode<synchronous>, transform_indices = @transform_11, window_bounds = array<i64: 1, 32>}, {pipeline_mode = #tpu.pipeline_mode<synchronous>, transform_indices = @transform_12, window_bounds = array<i64: 128, 32>}, {pipeline_mode = #tpu.pipeline_mode<synchronous>, transform_indices = @transform_13, window_bounds = array<i64: 128, 32>}, {pipeline_mode = #tpu.pipeline_mode<synchronous>, transform_indices = @transform_14, window_bounds = array<i64: 1, 32>}, {pipeline_mode = #tpu.pipeline_mode<synchronous>, transform_indices = @transform_15, window_bounds = array<i64: 32, 32>}, {pipeline_mode = #tpu.pipeline_mode<synchronous>, transform_indices = @transform_16, window_bounds = array<i64: 1, 32>}, {transform_indices = @transform_17, window_bounds = array<i64: 8, 96>}]} {
    %c0 = arith.constant 0 : index
    %c0_0 = arith.constant 0 : index
    %0 = vector.load %arg2[%c0, %c0_0] : memref<1x128xf32, #tpu.memory_space<vmem>>, vector<1x128xf32>
    %c0_1 = arith.constant 0 : index
    %c0_2 = arith.constant 0 : index
    %1 = vector.load %arg1[%c0_1, %c0_2] : memref<8x3xf32, #tpu.memory_space<vmem>>, vector<8x1xf32>
    %2 = vector.broadcast %1 : vector<8x1xf32> to vector<8x128xf32>
    %3 = vector.broadcast %0 : vector<1x128xf32> to vector<8x128xf32>
    %4 = arith.mulf %2, %3 : vector<8x128xf32>
    %5 = math.cos %4 : vector<8x128xf32>
    %c0_3 = arith.constant 0 : index
    %c0_4 = arith.constant 0 : index
    %6 = vector.load %arg3[%c0_3, %c0_4] : memref<128x32xf32, #tpu.memory_space<vmem>>, vector<128x32xf32>
    %cst = arith.constant dense<0.000000e+00> : vector<8x32xf32>
    %7 = tpu.matmul %5, %6, %cst {dimension_numbers = #tpu.dot_dimension_numbers<[1], [0], [0], [1], [0, 0, 1, 1], [], []>} : vector<8x128xf32>, vector<128x32xf32>, vector<8x32xf32> -> vector<8x32xf32>
    %8 = math.sin %4 : vector<8x128xf32>
    %c0_5 = arith.constant 0 : index
    %c0_6 = arith.constant 0 : index
    %9 = vector.load %arg4[%c0_5, %c0_6] : memref<128x32xf32, #tpu.memory_space<vmem>>, vector<128x32xf32>
    %cst_7 = arith.constant dense<0.000000e+00> : vector<8x32xf32>
    %10 = tpu.matmul %8, %9, %cst_7 {dimension_numbers = #tpu.dot_dimension_numbers<[1], [0], [0], [1], [0, 0, 1, 1], [], []>} : vector<8x128xf32>, vector<128x32xf32>, vector<8x32xf32> -> vector<8x32xf32>
    %11 = arith.addf %7, %10 : vector<8x32xf32>
    %c0_8 = arith.constant 0 : index
    %c0_9 = arith.constant 0 : index
    %12 = vector.load %arg5[%c0_8, %c0_9] : memref<1x32xf32, #tpu.memory_space<vmem>>, vector<1x32xf32>
    %13 = vector.broadcast %12 : vector<1x32xf32> to vector<8x32xf32>
    %14 = arith.addf %11, %13 : vector<8x32xf32>
    %15 = arith.negf %14 : vector<8x32xf32>
    %16 = math.exp %15 : vector<8x32xf32>
    %cst_10 = arith.constant 1.000000e+00 : f32
    %17 = vector.broadcast %cst_10 : f32 to vector<8x32xf32>
    %18 = arith.addf %17, %16 : vector<8x32xf32>
    %19 = arith.divf %17, %18 : vector<8x32xf32>
    %20 = arith.mulf %14, %19 : vector<8x32xf32>
    %c0_11 = arith.constant 0 : index
    %c0_12 = arith.constant 0 : index
    %21 = vector.load %arg6[%c0_11, %c0_12] : memref<32x32xf32, #tpu.memory_space<vmem>>, vector<32x32xf32>
    %cst_13 = arith.constant dense<0.000000e+00> : vector<8x32xf32>
    %22 = tpu.matmul %20, %21, %cst_13 {dimension_numbers = #tpu.dot_dimension_numbers<[1], [0], [0], [1], [0, 0, 1, 1], [], []>} : vector<8x32xf32>, vector<32x32xf32>, vector<8x32xf32> -> vector<8x32xf32>
    %c0_14 = arith.constant 0 : index
    %c0_15 = arith.constant 0 : index
    %23 = vector.load %arg7[%c0_14, %c0_15] : memref<1x32xf32, #tpu.memory_space<vmem>>, vector<1x32xf32>
    %24 = vector.broadcast %23 : vector<1x32xf32> to vector<8x32xf32>
    %25 = arith.addf %22, %24 : vector<8x32xf32>
    %c0_16 = arith.constant 0 : index
    %c1 = arith.constant 1 : index
    %26 = vector.load %arg1[%c0_16, %c1] : memref<8x3xf32, #tpu.memory_space<vmem>>, vector<8x1xf32>
    %27 = vector.broadcast %26 : vector<8x1xf32> to vector<8x128xf32>
    %28 = vector.broadcast %0 : vector<1x128xf32> to vector<8x128xf32>
    %29 = arith.mulf %27, %28 : vector<8x128xf32>
    %30 = math.cos %29 : vector<8x128xf32>
    %c0_17 = arith.constant 0 : index
    %c0_18 = arith.constant 0 : index
    %31 = vector.load %arg8[%c0_17, %c0_18] : memref<128x32xf32, #tpu.memory_space<vmem>>, vector<128x32xf32>
    %cst_19 = arith.constant dense<0.000000e+00> : vector<8x32xf32>
    %32 = tpu.matmul %30, %31, %cst_19 {dimension_numbers = #tpu.dot_dimension_numbers<[1], [0], [0], [1], [0, 0, 1, 1], [], []>} : vector<8x128xf32>, vector<128x32xf32>, vector<8x32xf32> -> vector<8x32xf32>
    %33 = math.sin %29 : vector<8x128xf32>
    %c0_20 = arith.constant 0 : index
    %c0_21 = arith.constant 0 : index
    %34 = vector.load %arg9[%c0_20, %c0_21] : memref<128x32xf32, #tpu.memory_space<vmem>>, vector<128x32xf32>
    %cst_22 = arith.constant dense<0.000000e+00> : vector<8x32xf32>
    %35 = tpu.matmul %33, %34, %cst_22 {dimension_numbers = #tpu.dot_dimension_numbers<[1], [0], [0], [1], [0, 0, 1, 1], [], []>} : vector<8x128xf32>, vector<128x32xf32>, vector<8x32xf32> -> vector<8x32xf32>
    %36 = arith.addf %32, %35 : vector<8x32xf32>
    %c0_23 = arith.constant 0 : index
    %c0_24 = arith.constant 0 : index
    %37 = vector.load %arg10[%c0_23, %c0_24] : memref<1x32xf32, #tpu.memory_space<vmem>>, vector<1x32xf32>
    %38 = vector.broadcast %37 : vector<1x32xf32> to vector<8x32xf32>
    %39 = arith.addf %36, %38 : vector<8x32xf32>
    %40 = arith.negf %39 : vector<8x32xf32>
    %41 = math.exp %40 : vector<8x32xf32>
    %cst_25 = arith.constant 1.000000e+00 : f32
    %42 = vector.broadcast %cst_25 : f32 to vector<8x32xf32>
    %43 = arith.addf %42, %41 : vector<8x32xf32>
    %44 = arith.divf %42, %43 : vector<8x32xf32>
    %45 = arith.mulf %39, %44 : vector<8x32xf32>
    %c0_26 = arith.constant 0 : index
    %c0_27 = arith.constant 0 : index
    %46 = vector.load %arg11[%c0_26, %c0_27] : memref<32x32xf32, #tpu.memory_space<vmem>>, vector<32x32xf32>
    %cst_28 = arith.constant dense<0.000000e+00> : vector<8x32xf32>
    %47 = tpu.matmul %45, %46, %cst_28 {dimension_numbers = #tpu.dot_dimension_numbers<[1], [0], [0], [1], [0, 0, 1, 1], [], []>} : vector<8x32xf32>, vector<32x32xf32>, vector<8x32xf32> -> vector<8x32xf32>
    %c0_29 = arith.constant 0 : index
    %c0_30 = arith.constant 0 : index
    %48 = vector.load %arg12[%c0_29, %c0_30] : memref<1x32xf32, #tpu.memory_space<vmem>>, vector<1x32xf32>
    %49 = vector.broadcast %48 : vector<1x32xf32> to vector<8x32xf32>
    %50 = arith.addf %47, %49 : vector<8x32xf32>
    %c0_31 = arith.constant 0 : index
    %c2 = arith.constant 2 : index
    %51 = vector.load %arg1[%c0_31, %c2] : memref<8x3xf32, #tpu.memory_space<vmem>>, vector<8x1xf32>
    %52 = vector.broadcast %51 : vector<8x1xf32> to vector<8x128xf32>
    %53 = vector.broadcast %0 : vector<1x128xf32> to vector<8x128xf32>
    %54 = arith.mulf %52, %53 : vector<8x128xf32>
    %55 = math.cos %54 : vector<8x128xf32>
    %c0_32 = arith.constant 0 : index
    %c0_33 = arith.constant 0 : index
    %56 = vector.load %arg13[%c0_32, %c0_33] : memref<128x32xf32, #tpu.memory_space<vmem>>, vector<128x32xf32>
    %cst_34 = arith.constant dense<0.000000e+00> : vector<8x32xf32>
    %57 = tpu.matmul %55, %56, %cst_34 {dimension_numbers = #tpu.dot_dimension_numbers<[1], [0], [0], [1], [0, 0, 1, 1], [], []>} : vector<8x128xf32>, vector<128x32xf32>, vector<8x32xf32> -> vector<8x32xf32>
    %58 = math.sin %54 : vector<8x128xf32>
    %c0_35 = arith.constant 0 : index
    %c0_36 = arith.constant 0 : index
    %59 = vector.load %arg14[%c0_35, %c0_36] : memref<128x32xf32, #tpu.memory_space<vmem>>, vector<128x32xf32>
    %cst_37 = arith.constant dense<0.000000e+00> : vector<8x32xf32>
    %60 = tpu.matmul %58, %59, %cst_37 {dimension_numbers = #tpu.dot_dimension_numbers<[1], [0], [0], [1], [0, 0, 1, 1], [], []>} : vector<8x128xf32>, vector<128x32xf32>, vector<8x32xf32> -> vector<8x32xf32>
    %61 = arith.addf %57, %60 : vector<8x32xf32>
    %c0_38 = arith.constant 0 : index
    %c0_39 = arith.constant 0 : index
    %62 = vector.load %arg15[%c0_38, %c0_39] : memref<1x32xf32, #tpu.memory_space<vmem>>, vector<1x32xf32>
    %63 = vector.broadcast %62 : vector<1x32xf32> to vector<8x32xf32>
    %64 = arith.addf %61, %63 : vector<8x32xf32>
    %65 = arith.negf %64 : vector<8x32xf32>
    %66 = math.exp %65 : vector<8x32xf32>
    %cst_40 = arith.constant 1.000000e+00 : f32
    %67 = vector.broadcast %cst_40 : f32 to vector<8x32xf32>
    %68 = arith.addf %67, %66 : vector<8x32xf32>
    %69 = arith.divf %67, %68 : vector<8x32xf32>
    %70 = arith.mulf %64, %69 : vector<8x32xf32>
    %c0_41 = arith.constant 0 : index
    %c0_42 = arith.constant 0 : index
    %71 = vector.load %arg16[%c0_41, %c0_42] : memref<32x32xf32, #tpu.memory_space<vmem>>, vector<32x32xf32>
    %cst_43 = arith.constant dense<0.000000e+00> : vector<8x32xf32>
    %72 = tpu.matmul %70, %71, %cst_43 {dimension_numbers = #tpu.dot_dimension_numbers<[1], [0], [0], [1], [0, 0, 1, 1], [], []>} : vector<8x32xf32>, vector<32x32xf32>, vector<8x32xf32> -> vector<8x32xf32>
    %c0_44 = arith.constant 0 : index
    %c0_45 = arith.constant 0 : index
    %73 = vector.load %arg17[%c0_44, %c0_45] : memref<1x32xf32, #tpu.memory_space<vmem>>, vector<1x32xf32>
    %74 = vector.broadcast %73 : vector<1x32xf32> to vector<8x32xf32>
    %75 = arith.addf %72, %74 : vector<8x32xf32>
    %76 = tpu.concatenate %25, %50, %75 in 1 : vector<8x32xf32>, vector<8x32xf32>, vector<8x32xf32> -> vector<8x96xf32>
    %c0_46 = arith.constant 0 : index
    %c0_47 = arith.constant 0 : index
    %77 = vector.load %arg18[%c0_46, %c0_47] : memref<8x96xf32, #tpu.memory_space<vmem>>, vector<8x96xf32>
    tpu.vector_store %arg18[%c0_46, %c0_47], %76 {strides = array<i32>} : memref<8x96xf32, #tpu.memory_space<vmem>>, vector<8x96xf32>,
    return
  }
  func.func @transform_0(%arg0: i32) -> (i32, i32) {
    %c0_i32 = arith.constant 0 : i32
    %c0_i32_0 = arith.constant 0 : i32
    return %arg0, %c0_i32 : i32, i32
  }
  func.func @transform_1(%arg0: i32) -> (i32, i32) {
    %c0_i32 = arith.constant 0 : i32
    %c0_i32_0 = arith.constant 0 : i32
    %c0_i32_1 = arith.constant 0 : i32
    return %c0_i32, %c0_i32_0 : i32, i32
  }
  func.func @transform_2(%arg0: i32) -> (i32, i32) {
    %c0_i32 = arith.constant 0 : i32
    %c0_i32_0 = arith.constant 0 : i32
    %c0_i32_1 = arith.constant 0 : i32
    return %c0_i32, %c0_i32_0 : i32, i32
  }
  func.func @transform_3(%arg0: i32) -> (i32, i32) {
    %c0_i32 = arith.constant 0 : i32
    %c0_i32_0 = arith.constant 0 : i32
    %c0_i32_1 = arith.constant 0 : i32
    return %c0_i32, %c0_i32_0 : i32, i32
  }
  func.func @transform_4(%arg0: i32) -> (i32, i32) {
    %c0_i32 = arith.constant 0 : i32
    %c0_i32_0 = arith.constant 0 : i32
    %c0_i32_1 = arith.constant 0 : i32
    return %c0_i32, %c0_i32_0 : i32, i32
  }
  func.func @transform_5(%arg0: i32) -> (i32, i32) {
    %c0_i32 = arith.constant 0 : i32
    %c0_i32_0 = arith.constant 0 : i32
    %c0_i32_1 = arith.constant 0 : i32
    return %c0_i32, %c0_i32_0 : i32, i32
  }
  func.func @transform_6(%arg0: i32) -> (i32, i32) {
    %c0_i32 = arith.constant 0 : i32
    %c0_i32_0 = arith.constant 0 : i32
    %c0_i32_1 = arith.constant 0 : i32
    return %c0_i32, %c0_i32_0 : i32, i32
  }
  func.func @transform_7(%arg0: i32) -> (i32, i32) {
    %c0_i32 = arith.constant 0 : i32
    %c0_i32_0 = arith.constant 0 : i32
    %c0_i32_1 = arith.constant 0 : i32
    return %c0_i32, %c0_i32_0 : i32, i32
  }
  func.func @transform_8(%arg0: i32) -> (i32, i32) {
    %c0_i32 = arith.constant 0 : i32
    %c0_i32_0 = arith.constant 0 : i32
    %c0_i32_1 = arith.constant 0 : i32
    return %c0_i32, %c0_i32_0 : i32, i32
  }
  func.func @transform_9(%arg0: i32) -> (i32, i32) {
    %c0_i32 = arith.constant 0 : i32
    %c0_i32_0 = arith.constant 0 : i32
    %c0_i32_1 = arith.constant 0 : i32
    return %c0_i32, %c0_i32_0 : i32, i32
  }
  func.func @transform_10(%arg0: i32) -> (i32, i32) {
    %c0_i32 = arith.constant 0 : i32
    %c0_i32_0 = arith.constant 0 : i32
    %c0_i32_1 = arith.constant 0 : i32
    return %c0_i32, %c0_i32_0 : i32, i32
  }
  func.func @transform_11(%arg0: i32) -> (i32, i32) {
    %c0_i32 = arith.constant 0 : i32
    %c0_i32_0 = arith.constant 0 : i32
    %c0_i32_1 = arith.constant 0 : i32
    return %c0_i32, %c0_i32_0 : i32, i32
  }
  func.func @transform_12(%arg0: i32) -> (i32, i32) {
    %c0_i32 = arith.constant 0 : i32
    %c0_i32_0 = arith.constant 0 : i32
    %c0_i32_1 = arith.constant 0 : i32
    return %c0_i32, %c0_i32_0 : i32, i32
  }
  func.func @transform_13(%arg0: i32) -> (i32, i32) {
    %c0_i32 = arith.constant 0 : i32
    %c0_i32_0 = arith.constant 0 : i32
    %c0_i32_1 = arith.constant 0 : i32
    return %c0_i32, %c0_i32_0 : i32, i32
  }
  func.func @transform_14(%arg0: i32) -> (i32, i32) {
    %c0_i32 = arith.constant 0 : i32
    %c0_i32_0 = arith.constant 0 : i32
    %c0_i32_1 = arith.constant 0 : i32
    return %c0_i32, %c0_i32_0 : i32, i32
  }
  func.func @transform_15(%arg0: i32) -> (i32, i32) {
    %c0_i32 = arith.constant 0 : i32
    %c0_i32_0 = arith.constant 0 : i32
    %c0_i32_1 = arith.constant 0 : i32
    return %c0_i32, %c0_i32_0 : i32, i32
  }
  func.func @transform_16(%arg0: i32) -> (i32, i32) {
    %c0_i32 = arith.constant 0 : i32
    %c0_i32_0 = arith.constant 0 : i32
    %c0_i32_1 = arith.constant 0 : i32
    return %c0_i32, %c0_i32_0 : i32, i32
  }
  func.func @transform_17(%arg0: i32) -> (i32, i32) {
    %c0_i32 = arith.constant 0 : i32
    %c0_i32_0 = arith.constant 0 : i32
    return %arg0, %c0_i32 : i32, i32
  }
}

</mosaic_0001>

<bundles_post_ra>
// kernel: tpu_custom_call.1
= control target key start
LH: loop header
LB: loop body
LE: loop exit
PB: predicated region body
PF: predicated region fallthrough
CT: control target
= control target key end

     0   :  { %s3473_s0 = inlined_call_operand.vmem [shape: f32[16,3], index: 0, kind: input, shape index: {}]   ;;  %s3474_s1 = inlined_call_operand.vmem [shape: f32[1,128], index: 1, kind: input, shape index: {}]   ;;  %s3475_s2 = inlined_call_operand.vmem [shape: f32[128,32], index: 2, kind: input, shape index: {}]   ;;  %s3476_s3 = inlined_call_operand.vmem [shape: f32[128,32], index: 3, kind: input, shape index: {}]   ;;  %s3477_s4 = inlined_call_operand.vmem [shape: f32[1,32], index: 4, kind: input, shape index: {}]   ;;  %s3478_s5 = inlined_call_operand.vmem [shape: f32[32,32], index: 5, kind: input, shape index: {}]   ;;  %s3479_s6 = inlined_call_operand.vmem [shape: f32[1,32], index: 6, kind: input, shape index: {}]   ;;  %s3480_s7 = inlined_call_operand.vmem [shape: f32[128,32], index: 7, kind: input, shape index: {}]   ;;  %s3481_s8 = inlined_call_operand.vmem [shape: f32[128,32], index: 8, kind: input, shape index: {}]   ;;  %s3482_s9 = inlined_call_operand.vmem [shape: f32[1,32], index: 9, kind: input, shape index: {}]   ;;  %s3483_s10 = inlined_call_operand.vmem [shape: f32[32,32], index: 10, kind: input, shape index: {}]   ;;  %s3484_s11 = inlined_call_operand.vmem [shape: f32[1,32], index: 11, kind: input, shape index: {}]   ;;  %s3485_s12 = inlined_call_operand.vmem [shape: f32[128,32], index: 12, kind: input, shape index: {}]   ;;  %s3486_s13 = inlined_call_operand.vmem [shape: f32[128,32], index: 13, kind: input, shape index: {}]   ;;  %s3487_s14 = inlined_call_operand.vmem [shape: f32[1,32], index: 14, kind: input, shape index: {}]   ;;  %s3488_s15 = inlined_call_operand.vmem [shape: f32[32,32], index: 15, kind: input, shape index: {}]   ;;  %s3489_s16 = inlined_call_operand.vmem [shape: f32[1,32], index: 16, kind: input, shape index: {}]   ;;  %s3490_s17 = inlined_call_operand.hbm [shape: f32[16,96], index: 17, kind: output, shape index: {}]  }
   0x1   :  { %3495 = sst [smem:[#allocation9_spill]] %s3473_s0 }
   0x2   :  { %3496 = sst [smem:[#allocation10_spill]] %s3474_s1 }
   0x3   :  { %3497 = sst [smem:[#allocation11_spill]] %s3475_s2 }
   0x4   :  { %22 = vsyncpa [#allocation3], 0 }
   0x5   :  { %24 = vsyncpa [#allocation3 + $0x1], 0  ;;  %s2754_s24 = smov 0   ;;  %s2756_s25 = smov 0  }
   0x6   :  { %s2758_s26 = smov 0   ;;  %s2760_s27 = smov 0  }
   0x7 LB: > { %3498 = sst [smem:[#allocation5_spill]] %s2644_s26  ;;  %s2775_s28 = sadd.s32 4294967295, %s2648_s27   ;;  %s2648_s27 = sphi %s2760_s27, %s3510_s27   ;;  %s2644_s26 = sphi %s2758_s26, %s3512_s26   ;;  %s2640_s25 = sphi %s2756_s25, %s3514_s25   ;;  %s2636_s24 = sphi %s2754_s24, %s3513_s24  }
   0x8   : > { %s2089_s29 = sadd.s32 4294967294, %s2648_s27   ;;  %s2779_s0 = sadd.s32 1, %s2648_s27  }
   0x9   : > { %3499 = sst [smem:[#allocation6_spill]] %s2779_s0  ;;  %s399_s30 = sadd.s32 1, %s2644_s26 }
   0xa   : > { %s396_s18 = ssub.s32 %s2648_s27, %s2779_s0  ;;  %p409_p0 = scmp.ne.s32.totalorder %s2644_s26, %s2640_s25 }
   0xb   : > { %p397_p1 = scmp.eq.s32.totalorder %s396_s18, 0  ;;  %p410_p2 = scmp.eq.s32.totalorder %s2775_s28, 1 }
   0xc   : > { %p415_p3 = scmp.ne.s32.totalorder %s2640_s25, %s2636_s24  ;;  %p416_p4 = scmp.eq.s32.totalorder %s2089_s29, 1 }
   0xd   : > { %s2790_s19 = scalar_select %p397_p1, %s2644_s26, %s399_s30  }
   0xe   : > { %p2792_p5 = por %p410_p2, %p409_p0  ;;  %p2796_p6 = por %p416_p4, %p415_p3 }
   0xf   : > { %3500 = sst [smem:[#allocation7_spill]] %s2790_s19  ;;  %p2092_p7 = scmp.ge.s32.totalorder %s2648_s27, 1 }
  0x10   : > { %s3502_s20 = scalar_select %p2796_p6, 1, 0 }
  0x11   : > { %p489_p8 = scmp.lt.s32.totalorder %s2648_s27, 3 }
  0x12   : > { %3503 = sst [smem:[#allocation8_spill]] %s3502_s20 }
  0x13   : > { %p490_p9 = pnand %p2092_p7, %p489_p8 }
  0x14   : > { %p540_p10 = scmp.lt.s32.totalorder (!%p490_p9), %s2775_s28, 1  ;;  %s3504_s30 = sld [smem:[#allocation9_spill]] (!%p490_p9) }
  0x15   : > { %493 = sbr.rel (%p490_p9) target bundleno = 1320 (0x528), region = 88  ;;  %s3505_s2 = sld [smem:[#allocation11_spill]] (!%p490_p9) }
  0x16   : > { %s3506_s23 = sld [smem:[#allocation10_spill]] (!%p490_p9)  ;;  %s2662_s19 = smov (!%p490_p9), 64  }
  0x17   : > { %s537_s20 = sand.u32 (!%p490_p9), 1, %s2640_s25  }
  0x1a   : > { %v2650_v0 = vmov 0   ;;  %s541_s21 = scalar_select %p540_p10, %s2775_s28, 1  ;;  %v2651_v2 = vmov 0.0   ;;  %v796_v3 = vld [vmem:[%s3476_s3 + $0x78] sm:$0xff]  ;;  %v2652_v5 = vmov 1   ;;  %v795_v6 = vld [vmem:[%s3476_s3 + $0x70] sm:$0xff] }
  0x1b   : > { %2560 = vset.pattern.permute.xlu0 %v2650_v0  ;;  %2253 = vmatprep.subr.mxu0 %v2651_v2  ;;  %v676_v4 = vld [vmem:[%s3505_s2 + $0x78] sm:$0xff]  ;;  %v675_v7 = vld [vmem:[%s3505_s2 + $0x70] sm:$0xff]  ;;  %v794_v8 = vld [vmem:[%s3476_s3 + $0x68] sm:$0xff]  ;;  %vm2653_vm0 = vmmov 0   ;;  %v2654_v49 = vmov 683565275  }
  0x1c   : > { %s2094_s22 = sshll.u32 %s541_s21, 3  ;;  %2288 = vmatprep.subr.mxu1 %v2651_v2  ;;  %2254 = vmatpush3.msra.mxu0 %v796_v3  ;;  %v674_v9 = vld [vmem:[%s3505_s2 + $0x68] sm:$0xff]  ;;  %v793_v10 = vld [vmem:[%s3476_s3 + $0x60] sm:$0xff]  ;;  %v792_v12 = vld [vmem:[%s3476_s3 + $0x58] sm:$0xff]  ;;  %v2655_v51 = vmov 2475754826  }
  0x1d   : > { %s543_s18 = scalar_lea.vmem %s3504_s30, %s2094_s22  ;;  %2289 = vmatpush3.msra.mxu1 %v676_v4  ;;  %2255 = vmatprep.subr.mxu0 %v2651_v2  ;;  %v673_v11 = vld [vmem:[%s3505_s2 + $0x60] sm:$0xff]  ;;  %v672_v13 = vld [vmem:[%s3505_s2 + $0x58] sm:$0xff]  ;;  %v791_v14 = vld [vmem:[%s3476_s3 + $0x50] sm:$0xff]  ;;  %v2656_v54 = vmov 2131351028   ;;  %s2661_s22 = smov 32  }
  0x1e   : > { %v2807_v1 = vld [vmem:[%s543_s18] sm:$0xff]  ;;  %2290 = vmatprep.subr.mxu1 %v2651_v2  ;;  %2256 = vmatpush3.msra.mxu0 %v795_v6  ;;  %v671_v15 = vld [vmem:[%s3505_s2 + $0x50] sm:$0xff]  ;;  %v790_v16 = vld [vmem:[%s3476_s3 + $0x48] sm:$0xff]  ;;  %v2657_v57 = vmov 2102212464   ;;  %s2093_s30 = sshll.u32 %s537_s20, 3 }
  0x1f   : > { %548 = vperm.xlu0 %2560, %v2807_v1   ;;  %2291 = vmatpush3.msra.mxu1 %v675_v7  ;;  %v670_v17 = vld [vmem:[%s3505_s2 + $0x48] sm:$0xff]  ;;  %v789_v18 = vld [vmem:[%s3476_s3 + $0x40] sm:$0xff]  ;;  %v788_v20 = vld [vmem:[%s3476_s3 + $0x38] sm:$0xff]  ;;  %v2658_v60 = vmov 920167782   ;;  %s2017_s18 = scalar_lea.sflag [#allocation3], %s537_s20 }
  0x20   : > { %2257 = vmatprep.subr.mxu0 %v2651_v2  ;;  %2292 = vmatprep.subr.mxu1 %v2651_v2  ;;  %v669_v19 = vld [vmem:[%s3505_s2 + $0x40] sm:$0xff]  ;;  %v668_v21 = vld [vmem:[%s3505_s2 + $0x38] sm:$0xff]  ;;  %v787_v22 = vld [vmem:[%s3476_s3 + $0x30] sm:$0xff]  ;;  %v2659_v63 = vmov 1326507024  }
  0x21   : > { %2258 = vmatpush3.msra.mxu0 %v794_v8  ;;  %2293 = vmatpush3.msra.mxu1 %v674_v9  ;;  %v667_v23 = vld [vmem:[%s3505_s2 + $0x30] sm:$0xff]  ;;  %v786_v24 = vld [vmem:[%s3476_s3 + $0x28] sm:$0xff]  ;;  %v785_v26 = vld [vmem:[%s3476_s3 + $0x20] sm:$0xff] }
  0x22   : > { %2259 = vmatprep.subr.mxu0 %v2651_v2  ;;  %2294 = vmatprep.subr.mxu1 %v2651_v2  ;;  %v666_v25 = vld [vmem:[%s3505_s2 + $0x28] sm:$0xff]  ;;  %v665_v27 = vld [vmem:[%s3505_s2 + $0x20] sm:$0xff]  ;;  %v784_v28 = vld [vmem:[%s3476_s3 + $0x18] sm:$0xff] }
  0x23   : > { %2561 = vset.pattern.permute.xlu0 %v2652_v5  ;;  %2260 = vmatpush3.msra.mxu0 %v793_v10  ;;  %v664_v29 = vld [vmem:[%s3505_s2 + $0x18] sm:$0xff]  ;;  %v783_v30 = vld [vmem:[%s3476_s3 + $0x10] sm:$0xff]  ;;  %v782_v32 = vld [vmem:[%s3476_s3 + $0x8] sm:$0xff] }
  0x24   : > { %1038 = vperm.xlu0 %2561, %v2807_v1   ;;  %2295 = vmatpush3.msra.mxu1 %v673_v11  ;;  %v663_v31 = vld [vmem:[%s3505_s2 + $0x10] sm:$0xff]  ;;  %v662_v33 = vld [vmem:[%s3505_s2 + $0x8] sm:$0xff]  ;;  %v781_v34 = vld [vmem:[%s3476_s3] sm:$0xff] }
  0x25   : > { %2261 = vmatprep.subr.mxu0 %v2651_v2  ;;  %2296 = vmatprep.subr.mxu1 %v2651_v2  ;;  %v661_v35 = vld [vmem:[%s3505_s2] sm:$0xff] }
  0x26   : > { %2262 = vmatpush3.msra.mxu0 %v792_v12  ;;  %2297 = vmatpush3.msra.mxu1 %v672_v13  ;;  %v2948_v36 = vld [vmem:[%s3506_s23] ss:$0 sm:$0xff]  ;;  %s539_s23 = scalar_lea.vmem [#allocation2], %s2093_s30 }
  0x27   : > { %2263 = vmatprep.subr.mxu0 %v2651_v2  ;;  %2298 = vmatprep.subr.mxu1 %v2651_v2  ;;  %s2030_s29 = sshll.u32 %s539_s23, 4  ;;  %s2031_s29 = int_to_ptr.vmem [resolvable:$true] %s2030_s29 }
  0x28   : > { %2264 = vmatpush3.msra.mxu0 %v791_v14  ;;  %2299 = vmatpush3.msra.mxu1 %v671_v15  ;;  %s2588_s21 = scalar_lea.vmem %s2031_s29, 128 }
  0x29   : > { %2265 = vmatprep.subr.mxu0 %v2651_v2  ;;  %2300 = vmatprep.subr.mxu1 %v2651_v2  ;;  %p2589_p11 = scmp.ne.s32.totalorder %s2031_s29, %s2588_s21 }
  0x2a   : > { %2266 = vmatpush3.msra.mxu0 %v790_v16  ;;  %2301 = vmatpush3.msra.mxu1 %v670_v17 }
  0x2b   : > { %2267 = vmatprep.subr.mxu0 %v2651_v2  ;;  %2302 = vmatprep.subr.mxu1 %v2651_v2  ;;  %p2590_p12 = pnand %p2589_p11, %p2792_p5 }
  0x2c   : > { %2268 = vmatpush3.msra.mxu0 %v789_v18  ;;  %2303 = vmatpush3.msra.mxu1 %v669_v19 }
  0x2d   : > { %2269 = vmatprep.subr.mxu0 %v2651_v2  ;;  %2304 = vmatprep.subr.mxu1 %v2651_v2  ;;  %p2591_p13 = pneg %p2590_p12 }
  0x2e   : > { %2270 = vmatpush3.msra.mxu0 %v788_v20  ;;  %2305 = vmatpush3.msra.mxu1 %v668_v21 }
  0x2f   : > { %2271 = vmatprep.subr.mxu0 %v2651_v2  ;;  %2306 = vmatprep.subr.mxu1 %v2651_v2 }
  0x30   : > { %2272 = vmatpush3.msra.mxu0 %v787_v22  ;;  %2307 = vmatpush3.msra.mxu1 %v667_v23 }
  0x31   : > { %2273 = vmatprep.subr.mxu0 %v2651_v2  ;;  %2308 = vmatprep.subr.mxu1 %v2651_v2 }
  0x32   : > { %2274 = vmatpush3.msra.mxu0 %v786_v24  ;;  %2309 = vmatpush3.msra.mxu1 %v666_v25 }
  0x33   : > { %2275 = vmatprep.subr.mxu0 %v2651_v2  ;;  %2310 = vmatprep.subr.mxu1 %v2651_v2 }
  0x34   : > { %2276 = vmatpush3.msra.mxu0 %v785_v26  ;;  %2311 = vmatpush3.msra.mxu1 %v665_v27 }
  0x35   : > { %2277 = vmatprep.subr.mxu0 %v2651_v2  ;;  %2312 = vmatprep.subr.mxu1 %v2651_v2 }
  0x36   : > { %2278 = vmatpush3.msra.mxu0 %v784_v28  ;;  %2313 = vmatpush3.msra.mxu1 %v664_v29 }
  0x37   : > { %2279 = vmatprep.subr.mxu0 %v2651_v2  ;;  %2314 = vmatprep.subr.mxu1 %v2651_v2 }
  0x38   : > { %2280 = vmatpush3.msra.mxu0 %v783_v30  ;;  %2315 = vmatpush3.msra.mxu1 %v663_v31 }
  0x39   : > { %2281 = vmatprep.subr.mxu0 %v2651_v2  ;;  %2316 = vmatprep.subr.mxu1 %v2651_v2 }
  0x3a   : > { %2282 = vmatpush3.msra.mxu0 %v782_v32  ;;  %2317 = vmatpush3.msra.mxu1 %v662_v33 }
  0x3b   : > { %2283 = vmatprep.subr.mxu0 %v2651_v2  ;;  %2318 = vmatprep.subr.mxu1 %v2651_v2 }
  0x3c   : > { %2284 = vmatpush3.msra.mxu0 %v781_v34  ;;  %2285 = vmatprep.mubr.msk.f32.mxu0 %vm2653_vm0, %v2651_v2 }
  0x3d   : > { %2319 = vmatpush3.msra.mxu1 %v661_v35  ;;  %2320 = vmatprep.mubr.msk.f32.mxu1 %vm2653_vm0, %v2651_v2 }
  0x3e   : > { %2334 = vmatprep.subr.mxu1 %v2651_v2  ;;  %2323 = vmatprep.subr.mxu0 %v2651_v2 }
  0x9a   : > { %v549_v37 = vpop.permute.xlu0 %548 }
  0x9b   : > { %v2951_v38 = vmul.f32 %v2948_v36, %v549_v37 }
  0x9d   : > { %v561_v39 = vand.u32 2139095040, %v2951_v38  ;;  %v558_v43 = vand.u32 2147483647, %v2951_v38  ;;  %vm560_vm8 = vcmp.lt.s32.totalorder %v2951_v38, 0 }
  0x9f   : > { %v562_v40 = vshrl.u32 %v561_v39, 23  ;;  %v565_v46 = vand.u32 8388607, %v558_v43  ;;  %vm559_vm9 = vcmp.le.f32.partialorder %v558_v43, 0.7853982 }
  0xa1   : > { %v2096_v41 = vadd.s32 4294967169, %v562_v40  ;;  %v566_v3 = vor.u32 8388608, %v565_v46 }
  0xa3   : > { %v568_v42 = vadd.s32 1, %v2096_v41  ;;  %v606_v17 = vshll.u32 %v566_v3, 8 }
  0xa5   : > { %vm569_vm1 = vcmp.gt.s32.totalorder %v568_v42, 0 }
  0xa6   : > { %v570_v44 = vsel %vm569_vm1, %v568_v42, 0 }
  0xa7   : > { %v572_v45 = vand.u32 31, %v570_v44  ;;  %v571_v48 = vshrl.u32 %v570_v44, 5 }
  0xa9   : > { %v573_v47 = vsub.s32 32, %v572_v45  ;;  %v575_v50 = vshll.u32 %v2654_v49, %v572_v45  ;;  %v578_v52 = vshll.u32 %v2655_v51, %v572_v45  ;;  %v581_v56 = vshll.u32 %v2656_v54, %v572_v45 }
  0xaa   : > { %v584_v59 = vshll.u32 %v2657_v57, %v572_v45  ;;  %v587_v62 = vshll.u32 %v2658_v60, %v572_v45  ;;  %vm590_vm2 = vcmp.lt.s32.totalorder %v571_v48, 1  ;;  %vm593_vm3 = vcmp.lt.s32.totalorder %v571_v48, 4 }
  0xab   : > { %v576_v53 = vshrl.u32 %v2655_v51, %v573_v47  ;;  %v579_v55 = vshrl.u32 %v2656_v54, %v573_v47  ;;  %v582_v58 = vshrl.u32 %v2657_v57, %v573_v47  ;;  %v585_v61 = vshrl.u32 %v2658_v60, %v573_v47 }
  0xac   : > { %v588_v0 = vshrl.u32 %v2659_v63, %v573_v47  ;;  %v574_v12 = vshrl.u32 %v2654_v49, %v573_v47  ;;  %vm592_vm4 = vcmp.lt.s32.totalorder %v571_v48, 3  ;;  %vm591_vm5 = vcmp.lt.s32.totalorder %v571_v48, 2 }
  0xad   : > { %v577_v4 = vor.u32 %v576_v53, %v575_v50  ;;  %v580_v5 = vor.u32 %v579_v55, %v578_v52  ;;  %v583_v6 = vor.u32 %v582_v58, %v581_v56  ;;  %v586_v7 = vor.u32 %v585_v61, %v584_v59  ;;  %v1039_v50 = vpop.permute.xlu0 %1038 }
  0xae   : > { %v589_v8 = vor.u32 %v588_v0, %v587_v62  ;;  %v2979_v55 = vmul.f32 %v2948_v36, %v1039_v50 }
  0xaf   : > { %v595_v9 = vsel %vm593_vm3, %v583_v6, 2102212464  ;;  %v598_v10 = vsel %vm590_vm2, %v577_v4, %v580_v5  ;;  %v602_v11 = vsel %vm590_vm2, %v580_v5, %v583_v6  ;;  %v599_v13 = vsel %vm593_vm3, %v586_v7, 920167782 }
  0xb0   : > { %v603_v14 = vsel %vm593_vm3, %v589_v8, 1326507024  ;;  %v600_v15 = vsel %vm592_vm4, %v583_v6, %v599_v13  ;;  %v594_v18 = vsel %vm590_vm2, %v574_v12, %v577_v4  ;;  %v596_v19 = vsel %vm592_vm4, %v580_v5, %v595_v9 }
  0xb1   : > { %v604_v16 = vsel %vm592_vm4, %v586_v7, %v603_v14  ;;  %v601_v20 = vsel %vm591_vm5, %v598_v10, %v600_v15  ;;  %v597_v26 = vsel %vm591_vm5, %v594_v18, %v596_v19  ;;  %v1045_v58 = vand.u32 2139095040, %v2979_v55 }
  0xb2   : > { %v605_v21 = vsel %vm591_vm5, %v602_v11, %v604_v16  ;;  %v2971_v24 = vmul.u32.u64.low %v606_v17, %v601_v20  ;;  %v2972_v25 = vmul.u32.u64.high %v606_v17, %v601_v20, %v2971_v24  ;;  %v613_v28 = vmul.u32 %v606_v17, %v597_v26 }
  0xb3   : > { %v2968_v22 = vmul.u32.u64.low %v606_v17, %v605_v21  ;;  %v2969_v23 = vmul.u32.u64.high %v606_v17, %v605_v21, %v2968_v22  ;;  %v1046_v62 = vshrl.u32 %v1045_v58, 23  ;;  %v1042_v6 = vand.u32 2147483647, %v2979_v55 }
  0xb4   : > { %v616_v27 = vadd.s32 1, %v2972_v25 }
  0xb5   : > { %vm615_vm6 = vc.u32 %v2969_v23, %v2971_v24  ;;  %v614_v42 = vadd.s32 %v2971_v24, %v2969_v23  ;;  %v2108_v4 = vadd.s32 4294967169, %v1046_v62  ;;  %v1049_v11 = vand.u32 8388607, %v1042_v6 }
  0xb6   : > { %v617_v29 = vsel %vm615_vm6, %v616_v27, %v2972_v25 }
  0xb7   : > { %v618_v30 = vadd.s32 %v617_v29, %v613_v28  ;;  %v1052_v7 = vadd.s32 1, %v2108_v4  ;;  %v1050_v19 = vor.u32 8388608, %v1049_v11 }
  0xb9   : > { %v619_v31 = vadd.s32 536870912, %v618_v30  ;;  %vm1053_vm10 = vcmp.gt.s32.totalorder %v1052_v7, 0 }
  0xba   : > { %v1054_v12 = vsel %vm1053_vm10, %v1052_v7, 0  ;;  %vm1043_vm10 = vcmp.le.f32.partialorder %v1042_v6, 0.7853982 }
  0xbb   : > { %v620_v32 = vshrl.u32 %v619_v31, 30  ;;  %v1056_v13 = vand.u32 31, %v1054_v12  ;;  %v1055_v15 = vshrl.u32 %v1054_v12, 5 }
  0xbd   : > { %v621_v33 = vshll.u32 %v620_v32, 30  ;;  %v644_v3 = vsub.s32 4, %v620_v32  ;;  %v1057_v16 = vsub.s32 32, %v1056_v13  ;;  %v1059_v17 = vshll.u32 %v2654_v49, %v1056_v13 }
  0xbe   : > { %v1062_v18 = vshll.u32 %v2655_v51, %v1056_v13  ;;  %v1065_v43 = vshll.u32 %v2656_v54, %v1056_v13  ;;  %v1068_v20 = vshll.u32 %v2657_v57, %v1056_v13  ;;  %v1071_v21 = vshll.u32 %v2658_v60, %v1056_v13 }
  0xbf   : > { %v622_v34 = vsub.s32 %v618_v30, %v621_v33  ;;  %v645_v9 = vsel %vm560_vm8, %v644_v3, %v620_v32  ;;  %v1060_v23 = vshrl.u32 %v2655_v51, %v1057_v16  ;;  %v1063_v24 = vshrl.u32 %v2656_v54, %v1057_v16 }
  0xc0   : > { %v647_v14 = vsel %vm559_vm9, 0, %v645_v9  ;;  %v1066_v25 = vshrl.u32 %v2657_v57, %v1057_v16  ;;  %v1058_v26 = vshrl.u32 %v2654_v49, %v1057_v16  ;;  %v1069_v27 = vshrl.u32 %v2658_v60, %v1057_v16 }
  0xc1   : > { %v624_v35 = vsub.s32 0, %v622_v34  ;;  %v770_v22 = vadd.s32 3, %v647_v14  ;;  %v1072_v28 = vshrl.u32 %v2659_v63, %v1057_v16  ;;  %vm1074_vm11 = vcmp.lt.s32.totalorder %v1055_v15, 1 }
  0xc2   : > { %v1061_v29 = vor.u32 %v1060_v23, %v1059_v17  ;;  %v1064_v30 = vor.u32 %v1063_v24, %v1062_v18  ;;  %v1067_v31 = vor.u32 %v1066_v25, %v1065_v43  ;;  %vm1077_vm12 = vcmp.lt.s32.totalorder %v1055_v15, 4  ;;  %v1279_v18 = vld [vmem:[%s3481_s8 + $0x70] sm:$0xff]  ;;  %v1278_v43 = vld [vmem:[%s3481_s8 + $0x68] sm:$0xff] }
  0xc3   : > { %v2097_v37 = vmin.u32 %v624_v35, %v622_v34  ;;  %v1070_v32 = vor.u32 %v1069_v27, %v1068_v20  ;;  %v1073_v33 = vor.u32 %v1072_v28, %v1071_v21  ;;  %vm1076_vm13 = vcmp.lt.s32.totalorder %v1055_v15, 3  ;;  %v1277_v20 = vld [vmem:[%s3481_s8 + $0x60] sm:$0xff]  ;;  %v1275_v24 = vld [vmem:[%s3481_s8 + $0x50] sm:$0xff] }
  0xc4   : > { %vm1075_vm14 = vcmp.lt.s32.totalorder %v1055_v15, 2  ;;  %v1079_v35 = vsel %vm1077_vm12, %v1067_v31, 2102212464  ;;  %v1273_v28 = vld [vmem:[%s3481_s8 + $0x40] sm:$0xff] }
  0xc5   : > { %v626_v39 = vclz %v2097_v37  ;;  %v1082_v37 = vsel %vm1074_vm11, %v1061_v29, %v1064_v30 }
  0xc7   : > { %v2098_v40 = vadd.s32 4294967294, %v626_v39  ;;  %v1086_v39 = vsel %vm1074_vm11, %v1064_v30, %v1067_v31 }
  0xc9   : > { %vm2099_vm7 = vcmp.lt.s32.totalorder %v2098_v40, 0 }
  0xca   : > { %v629_v41 = vsel %vm2099_vm7, 0, %v2098_v40  ;;  %v771_v40 = vand.u32 3, %v770_v22  ;;  %vm650_vm7 = vweird.f32 %v2951_v38  ;;  %v1276_v22 = vld [vmem:[%s3481_s8 + $0x58] sm:$0xff] }
  0xcb   : > { %v630_v44 = vsub.s32 32, %v629_v41  ;;  %v634_v45 = vsub.s32 4294967266, %v629_v41  ;;  %v631_v46 = vshll.u32 %v622_v34, %v629_v41  ;;  %v1090_v34 = vshll.u32 %v1050_v19, 8 }
  0xcc   : > { %v651_v41 = vand.u32 3, %v647_v14  ;;  %vm776_vm1 = vcmp.eq.s32.totalorder %v771_v40, 2  ;;  %vm772_vm4 = vcmp.lt.s32.totalorder %v771_v40, 2  ;;  %vm773_vm5 = vcmp.eq.s32.totalorder %v771_v40, 0  ;;  %v1280_v14 = vld [vmem:[%s3481_s8 + $0x78] sm:$0xff] }
  0xcd   : > { %v632_v47 = vshrl.u32 %v614_v42, %v630_v44  ;;  %v635_v48 = vadd.s32 127, %v634_v45  ;;  %v1083_v42 = vsel %vm1077_vm12, %v1070_v32, 920167782  ;;  %v1087_v44 = vsel %vm1077_vm12, %v1073_v33, 1326507024 }
  0xce   : > { %v1078_v45 = vsel %vm1074_vm11, %v1058_v26, %v1061_v29  ;;  %vm652_vm15 = vcmp.lt.s32.totalorder %v651_v41, 2  ;;  %vm653_vm2 = vcmp.eq.s32.totalorder %v651_v41, 0  ;;  %vm656_vm3 = vcmp.eq.s32.totalorder %v651_v41, 2  ;;  %v1274_v26 = vld [vmem:[%s3481_s8 + $0x48] sm:$0xff] }
  0xcf   : > { %v633_v52 = vor.u32 %v632_v47, %v631_v46  ;;  %v636_v53 = vshll.u32 %v635_v48, 23  ;;  %v1080_v46 = vsel %vm1076_vm13, %v1064_v30, %v1079_v35  ;;  %v1084_v47 = vsel %vm1076_vm13, %v1067_v31, %v1083_v42  ;;  %v1272_v30 = vld [vmem:[%s3481_s8 + $0x38] sm:$0xff] }
  0xd0   : > { %v1088_v48 = vsel %vm1076_vm13, %v1070_v32, %v1087_v44  ;;  %v1085_v50 = vsel %vm1075_vm14, %v1082_v37, %v1084_v47  ;;  %v1081_v3 = vsel %vm1075_vm14, %v1078_v45, %v1080_v46  ;;  %v1271_v32 = vld [vmem:[%s3481_s8 + $0x30] sm:$0xff]  ;;  %v1268_v44 = vld [vmem:[%s3481_s8 + $0x18] sm:$0xff] }
  0xd1   : > { %v637_v56 = vor.u32 4788187, %v636_v53  ;;  %v640_v61 = vcvt.s32.f32 %v633_v52  ;;  %v1089_v52 = vsel %vm1075_vm14, %v1086_v39, %v1088_v48  ;;  %v1269_v39 = vld [vmem:[%s3481_s8 + $0x20] sm:$0xff]  ;;  %v1267_v47 = vld [vmem:[%s3481_s8 + $0x10] sm:$0xff] }
  0xd3   : > { %v638_v59 = vand.u32 2147483647, %v637_v56  ;;  %v3005_v56 = vmul.u32.u64.low %v1090_v34, %v1089_v52  ;;  %v3006_v58 = vmul.u32.u64.high %v1090_v34, %v1089_v52, %v3005_v56  ;;  %v1266_v52 = vld [vmem:[%s3481_s8 + $0x8] sm:$0xff] }
  0xd5   : > { %v641_v0 = vmul.f32 %v640_v61, %v638_v59  ;;  %v3008_v59 = vmul.u32.u64.low %v1090_v34, %v1085_v50  ;;  %v3009_v61 = vmul.u32.u64.high %v1090_v34, %v1085_v50, %v3008_v59 }
  0xd7   : > { %v642_v5 = vxor.u32 2147483648, %v641_v0  ;;  %vm1099_vm6 = vc.u32 %v3006_v58, %v3008_v59  ;;  %v1100_v13 = vadd.s32 1, %v3009_v61  ;;  %v1098_v35 = vadd.s32 %v3008_v59, %v3006_v58  ;;  %v1265_v58 = vld [vmem:[%s3481_s8] sm:$0xff] }
  0xd9   : > { %v643_v8 = vsel %vm560_vm8, %v642_v5, %v641_v0  ;;  %v1101_v17 = vsel %vm1099_vm6, %v1100_v13, %v3009_v61 }
  0xda   : > { %v646_v10 = vsel %vm559_vm9, %v2951_v38, %v643_v8  ;;  %vm1044_vm9 = vcmp.lt.s32.totalorder %v2979_v55, 0 }
  0xdb   : > { %2564 = vcosq.f32 %v646_v10 }
  0xdc   : > { %2566 = vsinq.f32 %v646_v10  ;;  %v1097_v10 = vmul.u32 %v1090_v34, %v1081_v3  ;;  %v1270_v34 = vld [vmem:[%s3481_s8 + $0x28] sm:$0xff] }
  0xde   : > { %v1102_v38 = vadd.s32 %v1101_v17, %v1097_v10 }
  0xe0   : > { %v1103_v19 = vadd.s32 536870912, %v1102_v38 }
  0xe2   : > { %v3037_v21 = vshrl.u32 %v1103_v19, 30 }
  0xe4   : > { %v1105_v23 = vshll.u32 %v3037_v21, 30 }
  0xe6   : > { %v1106_v25 = vsub.s32 %v1102_v38, %v1105_v23  ;;  %v2660_v23 = vmov 2  }
  0xe7   : > { %2562 = vset.pattern.permute.xlu1 %v2660_v23  ;;  %2563 = vset.pattern.permute.xlu0 %v2660_v23 }
  0xe8   : > { %v2565_v53 = vpop.eup %2564  ;;  %v1108_v27 = vsub.s32 0, %v1106_v25  ;;  %1521 = vperm.xlu1 %2562, %v2807_v1  }
  0xe9   : > { %v2567_v62 = vpop.eup %2566  ;;  %v657_v0 = vxor.u32 2147483648, %v2565_v53 }
  0xea   : > { %v654_v4 = vxor.u32 2147483648, %v2567_v62  ;;  %v2109_v29 = vmin.u32 %v1108_v27, %v1106_v25 }
  0xeb   : > { %v778_v5 = vsel %vm776_vm1, %v657_v0, %v2567_v62  ;;  %v658_v7 = vsel %vm656_vm3, %v657_v0, %v2567_v62  ;;  %v1128_v62 = vsub.s32 4, %v3037_v21  ;;  %vm963_vm3 = vcmask 261120  }
  0xec   : > { %v775_v8 = vsel %vm773_vm5, %v2565_v53, %v654_v4  ;;  %v655_v9 = vsel %vm653_vm2, %v2565_v53, %v654_v4  ;;  %v1110_v31 = vclz %v2109_v29  ;;  %vm1134_vm2 = vweird.f32 %v2979_v55 }
  0xed   : > { %v779_v11 = vsel %vm772_vm4, %v775_v8, %v778_v5  ;;  %v659_v12 = vsel %vm652_vm15, %v655_v9, %v658_v7  ;;  %v1129_v5 = vsel %vm1044_vm9, %v1128_v62, %v3037_v21  ;;  %v953_v21 = vld [vmem:[%s3478_s5 + $0x8] sm:$0xff] }
  0xee   : > { %v780_v15 = vsel %vm650_vm7, nan, %v779_v11  ;;  %v660_v16 = vsel %vm650_vm7, nan, %v659_v12  ;;  %v2110_v33 = vadd.s32 4294967294, %v1110_v31  ;;  %v1131_v7 = vsel %vm1043_vm10, 0, %v1129_v5 }
  0xef   : > { %2286 = vmatmul.mubr.f32.vlgmr.msra.gmra.mxu0 %v780_v15  ;;  %2321 = vmatmul.mubr.f32.vlgmr.msra.gmra.mxu1 %v660_v16  ;;  %v1254_v8 = vadd.s32 3, %v1131_v7  ;;  %v1135_v10 = vand.u32 3, %v1131_v7 }
  0xf0   : > { %2335 = vmatpush3.msra.mxu1 %v1280_v14  ;;  %2366 = vmatprep.mubr.msk.f32.mxu1 %vm2653_vm0, %v2651_v2  ;;  %vm2111_vm8 = vcmp.lt.s32.totalorder %v2110_v33, 0 }
  0xf1   : > { %2336 = vmatprep.subr.mxu1 %v2651_v2  ;;  %2331 = vmatprep.mubr.msk.f32.mxu0 %vm2653_vm0, %v2651_v2  ;;  %v1113_v37 = vsel %vm2111_vm8, 0, %v2110_v33  ;;  %v1255_v9 = vand.u32 3, %v1254_v8  ;;  %vm1140_vm12 = vcmp.eq.s32.totalorder %v1135_v10, 2  ;;  %vm1137_vm14 = vcmp.eq.s32.totalorder %v1135_v10, 0  ;;  %v1153_v8 = vld [vmem:[%s3480_s7 + $0x40] sm:$0xff] }
  0xf2   : > { %2337 = vmatpush3.msra.mxu1 %v1279_v18  ;;  %v1114_v40 = vsub.s32 32, %v1113_v37  ;;  %v1115_v41 = vshll.u32 %v1106_v25, %v1113_v37  ;;  %v1118_v42 = vsub.s32 4294967266, %v1113_v37  ;;  %vm1136_vm1 = vcmp.lt.s32.totalorder %v1135_v10, 2 }
  0xf3   : > { %2338 = vmatprep.subr.mxu1 %v2651_v2  ;;  %vm1260_vm11 = vcmp.eq.s32.totalorder %v1255_v9, 2  ;;  %vm1257_vm13 = vcmp.eq.s32.totalorder %v1255_v9, 0  ;;  %vm1256_vm15 = vcmp.lt.s32.totalorder %v1255_v9, 2 }
  0xf4   : > { %2339 = vmatpush3.msra.mxu1 %v1278_v43  ;;  %v1116_v45 = vshrl.u32 %v1098_v35, %v1114_v40  ;;  %v1119_v46 = vadd.s32 127, %v1118_v42 }
  0xf5   : > { %2340 = vmatprep.subr.mxu1 %v2651_v2 }
  0xf6   : > { %2341 = vmatpush3.msra.mxu1 %v1277_v20  ;;  %v1117_v48 = vor.u32 %v1116_v45, %v1115_v41  ;;  %v1120_v50 = vshll.u32 %v1119_v46, 23  ;;  %v955_v20 = vld [vmem:[%s3478_s5 + $0x18] sm:$0xff]  ;;  %v1159_v41 = vld [vmem:[%s3480_s7 + $0x70] sm:$0xff]  ;;  %v1157_v46 = vld [vmem:[%s3480_s7 + $0x60] sm:$0xff] }
  0xf7   : > { %2342 = vmatprep.subr.mxu1 %v2651_v2  ;;  %2324 = vmatpush3.msra.mxu0 %v955_v20 }
  0xf8   : > { %2343 = vmatpush3.msra.mxu1 %v1276_v22  ;;  %v1121_v53 = vor.u32 4788187, %v1120_v50  ;;  %v1124_v56 = vcvt.s32.f32 %v1117_v48  ;;  %2325 = vmatprep.subr.mxu0 %v2651_v2  ;;  %v952_v22 = vld [vmem:[%s3478_s5] sm:$0xff]  ;;  %v1156_v50 = vld [vmem:[%s3480_s7 + $0x58] sm:$0xff] }
  0xf9   : > { %2344 = vmatprep.subr.mxu1 %v2651_v2 }
  0xfa   : > { %2345 = vmatpush3.msra.mxu1 %v1275_v24  ;;  %v1122_v59 = vand.u32 2147483647, %v1121_v53  ;;  %v1155_v53 = vld [vmem:[%s3480_s7 + $0x50] sm:$0xff] }
  0xfb   : > { %2346 = vmatprep.subr.mxu1 %v2651_v2 }
  0xfc   : > { %2347 = vmatpush3.msra.mxu1 %v1274_v26  ;;  %v1125_v61 = vmul.f32 %v1124_v56, %v1122_v59  ;;  %v2104_v26 = vld [vmem:[%s3477_s4] ss:$0 sm:$0xff] }
  0xfd   : > { %2348 = vmatprep.subr.mxu1 %v2651_v2 }
  0xfe   : > { %2349 = vmatpush3.msra.mxu1 %v1273_v28  ;;  %v1126_v0 = vxor.u32 2147483648, %v1125_v61 }
  0xff   : > { %2350 = vmatprep.subr.mxu1 %v2651_v2 }
 0x100   : > { %2351 = vmatpush3.msra.mxu1 %v1272_v30  ;;  %v1127_v3 = vsel %vm1044_vm9, %v1126_v0, %v1125_v61  ;;  %v1154_v61 = vld [vmem:[%s3480_s7 + $0x48] sm:$0xff] }
 0x101   : > { %2352 = vmatprep.subr.mxu1 %v2651_v2  ;;  %v1130_v4 = vsel %vm1043_vm10, %v2979_v55, %v1127_v3  ;;  %v954_v55 = vld [vmem:[%s3478_s5 + $0x10] sm:$0xff] }
 0x102   : > { %2353 = vmatpush3.msra.mxu1 %v1271_v32  ;;  %2568 = vcosq.f32 %v1130_v4  ;;  %2326 = vmatpush3.msra.mxu0 %v954_v55 }
 0x103   : > { %2354 = vmatprep.subr.mxu1 %v2651_v2  ;;  %2570 = vsinq.f32 %v1130_v4  ;;  %2327 = vmatprep.subr.mxu0 %v2651_v2 }
 0x104   : > { %2355 = vmatpush3.msra.mxu1 %v1270_v34  ;;  %2328 = vmatpush3.msra.mxu0 %v953_v21  ;;  %v1150_v21 = vld [vmem:[%s3480_s7 + $0x28] sm:$0xff] }
 0x105   : > { %2356 = vmatprep.subr.mxu1 %v2651_v2  ;;  %2329 = vmatprep.subr.mxu0 %v2651_v2 }
 0x106   : > { %2357 = vmatpush3.msra.mxu1 %v1269_v39  ;;  %2330 = vmatpush3.msra.mxu0 %v952_v22  ;;  %v1160_v39 = vld [vmem:[%s3480_s7 + $0x78] sm:$0xff] }
 0x107   : > { %2358 = vmatprep.subr.mxu1 %v2651_v2  ;;  %2369 = vmatprep.subr.mxu0 %v2651_v2 }
 0x108   : > { %2359 = vmatpush3.msra.mxu1 %v1268_v44  ;;  %v1158_v44 = vld [vmem:[%s3480_s7 + $0x68] sm:$0xff] }
 0x109   : > { %2360 = vmatprep.subr.mxu1 %v2651_v2 }
 0x10a   : > { %2361 = vmatpush3.msra.mxu1 %v1267_v47 }
 0x10b   : > { %2362 = vmatprep.subr.mxu1 %v2651_v2 }
 0x10c   : > { %2363 = vmatpush3.msra.mxu1 %v1266_v52 }
 0x10d   : > { %2364 = vmatprep.subr.mxu1 %v2651_v2 }
 0x10e   : > { %2365 = vmatpush3.msra.mxu1 %v1265_v58 }
 0x10f   : > { %2404 = vmatprep.subr.mxu1 %v2651_v2  ;;  %v2569_v11 = vpop.eup %2568 }
 0x110   : > { %v2571_v12 = vpop.eup %2570  ;;  %v1141_v13 = vxor.u32 2147483648, %v2569_v11 }
 0x111   : > { %v1138_v6 = vxor.u32 2147483648, %v2571_v12 }
 0x112   : > { %v1262_v14 = vsel %vm1260_vm11, %v1141_v13, %v2571_v12  ;;  %v1142_v15 = vsel %vm1140_vm12, %v1141_v13, %v2571_v12 }
 0x113   : > { %v1259_v16 = vsel %vm1257_vm13, %v2569_v11, %v1138_v6  ;;  %v1139_v17 = vsel %vm1137_vm14, %v2569_v11, %v1138_v6 }
 0x114   : > { %v1263_v18 = vsel %vm1256_vm15, %v1259_v16, %v1262_v14  ;;  %v1143_v38 = vsel %vm1136_vm1, %v1139_v17, %v1142_v15  ;;  %v1152_v15 = vld [vmem:[%s3480_s7 + $0x38] sm:$0xff] }
 0x115   : > { %v1264_v43 = vsel %vm1134_vm2, nan, %v1263_v18  ;;  %v3099_v19 = vsel %vm1134_vm2, nan, %v1143_v38 }
 0x116   : > { %2367 = vmatmul.mubr.f32.vlgmr.msra.gmra.mxu1 %v1264_v43 }
 0x117   : > { %2412 = vmatprep.mubr.msk.f32.mxu1 %vm2653_vm0, %v2651_v2 }
 0x163   : > { %v1522_v34 = vpop.permute.xlu1 %1521 }
 0x164   : > { %v3124_v35 = vmul.f32 %v2948_v36, %v1522_v34  ;;  %v1148_v34 = vld [vmem:[%s3480_s7 + $0x18] sm:$0xff] }
 0x166   : > { %v1528_v40 = vand.u32 2139095040, %v3124_v35  ;;  %v1525_v36 = vand.u32 2147483647, %v3124_v35  ;;  %vm1527_vm11 = vcmp.lt.s32.totalorder %v3124_v35, 0  ;;  %vm1617_vm1 = vweird.f32 %v3124_v35 }
 0x168   : > { %v1529_v42 = vshrl.u32 %v1528_v40, 23  ;;  %v1532_v48 = vand.u32 8388607, %v1525_v36  ;;  %v1146_v40 = vld [vmem:[%s3480_s7 + $0x8] sm:$0xff]  ;;  %vm3260_vm12 = vcmp.le.f32.partialorder %v1525_v36, 0.7853982 }
 0x169   : > { %v1755_v36 = vld [vmem:[%s3486_s13 + $0x38] sm:$0xff] }
 0x16a   : > { %v2120_v45 = vadd.s32 4294967169, %v1529_v42  ;;  %v1533_v58 = vor.u32 8388608, %v1532_v48  ;;  %v1762_v48 = vld [vmem:[%s3486_s13 + $0x70] sm:$0xff] }
 0x16c   : > { %v1535_v47 = vadd.s32 1, %v2120_v45  ;;  %v1573_v14 = vshll.u32 %v1533_v58, 8  ;;  %v1759_v58 = vld [vmem:[%s3486_s13 + $0x58] sm:$0xff] }
 0x16e   : > { %vm1536_vm4 = vcmp.gt.s32.totalorder %v1535_v47, 0 }
 0x16f   : > { %v1537_v52 = vsel %vm1536_vm4, %v1535_v47, 0 }
 0x170   : > { %v1539_v56 = vand.u32 31, %v1537_v52  ;;  %v1538_v59 = vshrl.u32 %v1537_v52, 5  ;;  %v1761_v52 = vld [vmem:[%s3486_s13 + $0x68] sm:$0xff] }
 0x172   : > { %v1540_v62 = vsub.s32 32, %v1539_v56  ;;  %v1542_v0 = vshll.u32 %v2654_v49, %v1539_v56  ;;  %v1545_v3 = vshll.u32 %v2655_v51, %v1539_v56  ;;  %v1548_v4 = vshll.u32 %v2656_v54, %v1539_v56 }
 0x173   : > { %v1551_v5 = vshll.u32 %v2657_v57, %v1539_v56  ;;  %v1554_v7 = vshll.u32 %v2658_v60, %v1539_v56  ;;  %vm1557_vm5 = vcmp.lt.s32.totalorder %v1538_v59, 1  ;;  %vm1560_vm6 = vcmp.lt.s32.totalorder %v1538_v59, 4 }
 0x174   : > { %v1541_v9 = vshrl.u32 %v2654_v49, %v1540_v62  ;;  %v1543_v10 = vshrl.u32 %v2655_v51, %v1540_v62  ;;  %v1546_v11 = vshrl.u32 %v2656_v54, %v1540_v62  ;;  %v1549_v12 = vshrl.u32 %v2657_v57, %v1540_v62 }
 0x175   : > { %v1552_v13 = vshrl.u32 %v2658_v60, %v1540_v62  ;;  %v1555_v6 = vshrl.u32 %v2659_v63, %v1540_v62  ;;  %vm1558_vm7 = vcmp.lt.s32.totalorder %v1538_v59, 2  ;;  %vm1559_vm8 = vcmp.lt.s32.totalorder %v1538_v59, 3  ;;  %v1151_v60 = vld [vmem:[%s3480_s7 + $0x30] sm:$0xff] }
 0x176   : > { %v1544_v49 = vor.u32 %v1543_v10, %v1542_v0  ;;  %v1547_v16 = vor.u32 %v1546_v11, %v1545_v3  ;;  %v1550_v51 = vor.u32 %v1549_v12, %v1548_v4  ;;  %v1757_v0 = vld [vmem:[%s3486_s13 + $0x48] sm:$0xff] }
 0x177   : > { %v1553_v54 = vor.u32 %v1552_v13, %v1551_v5  ;;  %v1556_v57 = vor.u32 %v1555_v6, %v1554_v7 }
 0x178   : > { %v1561_v63 = vsel %vm1557_vm5, %v1541_v9, %v1544_v49  ;;  %v1562_v17 = vsel %vm1560_vm6, %v1550_v51, 2102212464  ;;  %v1565_v18 = vsel %vm1557_vm5, %v1544_v49, %v1547_v16  ;;  %v1569_v38 = vsel %vm1557_vm5, %v1547_v16, %v1550_v51 }
 0x179   : > { %v1563_v43 = vsel %vm1559_vm8, %v1547_v16, %v1562_v17  ;;  %v1566_v20 = vsel %vm1560_vm6, %v1553_v54, 920167782  ;;  %v1570_v55 = vsel %vm1560_vm6, %v1556_v57, 1326507024  ;;  %v1754_v17 = vld [vmem:[%s3486_s13 + $0x30] sm:$0xff]  ;;  %v1629_v16 = vld [vmem:[%s3485_s12 + $0x8] sm:$0xff] }
 0x17a   : > { %v1567_v22 = vsel %vm1559_vm8, %v1550_v51, %v1566_v20  ;;  %v1571_v23 = vsel %vm1559_vm8, %v1553_v54, %v1570_v55  ;;  %v1752_v55 = vld [vmem:[%s3486_s13 + $0x20] sm:$0xff]  ;;  %vm2014_vm6 = vcmask 785408  }
 0x1af   : > { %v863_v24 = vpop.f32.mrf.mxu0  ;;  %v933_v25 = vpop.f32.mrf.mxu1 }
 0x1b0   : > { %v934_v27 = vadd.f32 %v933_v25, %v863_v24  ;;  %v1564_v25 = vsel %vm1558_vm7, %v1561_v63, %v1563_v43 }
 0x1b1   : > { %v2287_v28 = vpop.f32.mrf.mxu0  ;;  %v2322_v29 = vpop.f32.mrf.mxu1 }
 0x1b2   : > { %v944_v30 = vadd.f32 %v2104_v26, %v934_v27  ;;  %v1568_v26 = vsel %vm1558_vm7, %v1565_v18, %v1567_v22  ;;  %v1572_v27 = vsel %vm1558_vm7, %v1569_v38, %v1571_v23  ;;  %v1149_v28 = vld [vmem:[%s3480_s7 + $0x20] sm:$0xff]  ;;  %v1753_v38 = vld [vmem:[%s3486_s13 + $0x28] sm:$0xff]  ;;  %v1751_v22 = vld [vmem:[%s3486_s13 + $0x18] sm:$0xff] }
 0x1b3   : > { %v1750_v23 = vld [vmem:[%s3486_s13 + $0x10] sm:$0xff] }
 0x1b4   : > { %v2105_v31 = vmul.f32 -1.442695, %v944_v30 }
 0x1b6   : > { %2572 = vpow2.f32 %v2105_v31 }
 0x1c3   : > { %v2573_v32 = vpop.eup %2572 }
 0x1c4   : > { %v948_v33 = vadd.f32 1.0, %v2573_v32  ;;  %v3201_v31 = vmul.u32.u64.low %v1573_v14, %v1568_v26  ;;  %v3202_v32 = vmul.u32.u64.high %v1573_v14, %v1568_v26, %v3201_v31 }
 0x1c6   : > { %2574 = vrcp.f32 %v948_v33 }
 0x1d3   : > { %v2575_v1 = vpop.eup %2574 }
 0x1d4   : > { %v951_v37 = vmul.f32 %v2575_v1, %v944_v30  ;;  %v3198_v29 = vmul.u32.u64.low %v1573_v14, %v1572_v27  ;;  %v3199_v30 = vmul.u32.u64.high %v1573_v14, %v1572_v27, %v3198_v29  ;;  %v1580_v1 = vmul.u32 %v1573_v14, %v1564_v25  ;;  %v1749_v27 = vld [vmem:[%s3486_s13 + $0x8] sm:$0xff] }
 0x1d6   : > { %2332 = vmatmul.mubr.msk.f32.vlgmr.msra.gmra.mxu0 %vm963_vm3, %v951_v37  ;;  %v3189_v24 = vpop.f32.mrf.mxu1  ;;  %v1147_v37 = vld [vmem:[%s3480_s7 + $0x10] sm:$0xff]  ;;  %vm1582_vm9 = vc.u32 %v3199_v30, %v3201_v31  ;;  %v1581_v4 = vadd.s32 %v3201_v31, %v3199_v30  ;;  %v1748_v30 = vld [vmem:[%s3486_s13] sm:$0xff] }
 0x1d7   : > { %2370 = vmatpush3.msra.mxu0 %v1160_v39  ;;  %2401 = vmatprep.mubr.msk.f32.mxu0 %vm2653_vm0, %v2651_v2  ;;  %v1583_v39 = vadd.s32 1, %v3202_v32 }
 0x1d8   : > { %2371 = vmatprep.subr.mxu0 %v2651_v2  ;;  %v2368_v33 = vpop.f32.mrf.mxu1 }
 0x1d9   : > { %2372 = vmatpush3.msra.mxu0 %v1159_v41  ;;  %v1584_v41 = vsel %vm1582_vm9, %v1583_v39, %v3202_v32 }
 0x1da   : > { %2373 = vmatprep.subr.mxu0 %v2651_v2  ;;  %v1585_v42 = vadd.s32 %v1584_v41, %v1580_v1 }
 0x1db   : > { %2374 = vmatpush3.msra.mxu0 %v1158_v44  ;;  %v1145_v44 = vld [vmem:[%s3480_s7] sm:$0xff] }
 0x1dc   : > { %2375 = vmatprep.subr.mxu0 %v2651_v2  ;;  %v1586_v45 = vadd.s32 536870912, %v1585_v42 }
 0x1dd   : > { %2376 = vmatpush3.msra.mxu0 %v1157_v46  ;;  %v1763_v46 = vld [vmem:[%s3486_s13 + $0x78] sm:$0xff] }
 0x1de   : > { %2377 = vmatprep.subr.mxu0 %v2651_v2  ;;  %v1587_v47 = vshrl.u32 %v1586_v45, 30  ;;  %v1436_v45 = vld [vmem:[%s3483_s10] sm:$0xff] }
 0x1df   : > { %2378 = vmatpush3.msra.mxu0 %v1156_v50 }
 0x1e0   : > { %2379 = vmatprep.subr.mxu0 %v2651_v2  ;;  %v1588_v50 = vshll.u32 %v1587_v47, 30  ;;  %v1611_v63 = vsub.s32 4, %v1587_v47 }
 0x1e1   : > { %2380 = vmatpush3.msra.mxu0 %v1155_v53 }
 0x1e2   : > { %2381 = vmatprep.subr.mxu0 %v2651_v2  ;;  %v1589_v53 = vsub.s32 %v1585_v42, %v1588_v50  ;;  %v1612_v18 = vsel %vm1527_vm11, %v1611_v63, %v1587_v47  ;;  %v1439_v42 = vld [vmem:[%s3483_s10 + $0x18] sm:$0xff]  ;;  %v2116_v50 = vld [vmem:[%s3482_s9] ss:$0 sm:$0xff] }
 0x1e3   : > { %2382 = vmatpush3.msra.mxu0 %v1154_v61  ;;  %v1758_v61 = vld [vmem:[%s3486_s13 + $0x50] sm:$0xff]  ;;  %v1614_v43 = vsel %vm3260_vm12, 0, %v1612_v18  ;;  %2405 = vmatpush3.msra.mxu1 %v1439_v42  ;;  %v2118_v63 = vld [vmem:[%s3484_s11] ss:$0 sm:$0xff] }
 0x1e4   : > { %2383 = vmatprep.subr.mxu0 %v2651_v2  ;;  %v1591_v56 = vsub.s32 0, %v1589_v53  ;;  %v1737_v20 = vadd.s32 3, %v1614_v43  ;;  %v1618_v33 = vand.u32 3, %v1614_v43  ;;  %2406 = vmatprep.subr.mxu1 %v2651_v2 }
 0x1e5   : > { %2384 = vmatpush3.msra.mxu0 %v1153_v8 }
 0x1e6   : > { %2385 = vmatprep.subr.mxu0 %v2651_v2  ;;  %v2121_v59 = vmin.u32 %v1591_v56, %v1589_v53  ;;  %vm1620_vm2 = vcmp.eq.s32.totalorder %v1618_v33, 0  ;;  %vm1623_vm4 = vcmp.eq.s32.totalorder %v1618_v33, 2  ;;  %vm1619_vm5 = vcmp.lt.s32.totalorder %v1618_v33, 2 }
 0x1e7   : > { %2386 = vmatpush3.msra.mxu0 %v1152_v15 }
 0x1e8   : > { %2387 = vmatprep.subr.mxu0 %v2651_v2  ;;  %v1593_v62 = vclz %v2121_v59 }
 0x1e9   : > { %2388 = vmatpush3.msra.mxu0 %v1151_v60  ;;  %v1756_v60 = vld [vmem:[%s3486_s13 + $0x40] sm:$0xff] }
 0x1ea   : > { %2389 = vmatprep.subr.mxu0 %v2651_v2  ;;  %v2122_v3 = vadd.s32 4294967294, %v1593_v62 }
 0x1eb   : > { %2390 = vmatpush3.msra.mxu0 %v1150_v21  ;;  %v1738_v21 = vand.u32 3, %v1737_v20  ;;  %v2128_v20 = vld [vmem:[%s3487_s14] ss:$0 sm:$0xff] }
 0x1ec   : > { %2391 = vmatprep.subr.mxu0 %v2651_v2  ;;  %vm2123_vm10 = vcmp.lt.s32.totalorder %v2122_v3, 0 }
 0x1ed   : > { %2392 = vmatpush3.msra.mxu0 %v1149_v28  ;;  %v1596_v5 = vsel %vm2123_vm10, 0, %v2122_v3  ;;  %vm1743_vm13 = vcmp.eq.s32.totalorder %v1738_v21, 2  ;;  %vm1740_vm14 = vcmp.eq.s32.totalorder %v1738_v21, 0  ;;  %vm1739_vm15 = vcmp.lt.s32.totalorder %v1738_v21, 2  ;;  %v1642_v3 = vld [vmem:[%s3485_s12 + $0x70] sm:$0xff] }
 0x1ee   : > { %2393 = vmatprep.subr.mxu0 %v2651_v2  ;;  %v1597_v7 = vsub.s32 32, %v1596_v5  ;;  %v1598_v8 = vshll.u32 %v1589_v53, %v1596_v5  ;;  %v1601_v9 = vsub.s32 4294967266, %v1596_v5  ;;  %v1639_v5 = vld [vmem:[%s3485_s12 + $0x58] sm:$0xff] }
 0x1ef   : > { %2394 = vmatpush3.msra.mxu0 %v1148_v34 }
 0x1f0   : > { %2395 = vmatprep.subr.mxu0 %v2651_v2  ;;  %v1599_v10 = vshrl.u32 %v1581_v4, %v1597_v7  ;;  %v1602_v11 = vadd.s32 127, %v1601_v9  ;;  %v1640_v4 = vld [vmem:[%s3485_s12 + $0x60] sm:$0xff]  ;;  %v1638_v7 = vld [vmem:[%s3485_s12 + $0x50] sm:$0xff] }
 0x1f1   : > { %2396 = vmatpush3.msra.mxu0 %v1147_v37  ;;  %v1636_v9 = vld [vmem:[%s3485_s12 + $0x40] sm:$0xff] }
 0x1f2   : > { %2397 = vmatprep.subr.mxu0 %v2651_v2  ;;  %v1600_v12 = vor.u32 %v1599_v10, %v1598_v8  ;;  %v1603_v13 = vshll.u32 %v1602_v11, 23  ;;  %v1637_v8 = vld [vmem:[%s3485_s12 + $0x48] sm:$0xff]  ;;  %v1635_v11 = vld [vmem:[%s3485_s12 + $0x38] sm:$0xff] }
 0x1f3   : > { %2398 = vmatpush3.msra.mxu0 %v1146_v40 }
 0x1f4   : > { %2399 = vmatprep.subr.mxu0 %v2651_v2  ;;  %v1604_v6 = vor.u32 4788187, %v1603_v13  ;;  %v1607_v14 = vcvt.s32.f32 %v1600_v12  ;;  %v1634_v13 = vld [vmem:[%s3485_s12 + $0x30] sm:$0xff] }
 0x1f5   : > { %2400 = vmatpush3.msra.mxu0 %v1145_v44  ;;  %v1438_v44 = vld [vmem:[%s3483_s10 + $0x10] sm:$0xff] }
 0x1f6   : > { %2402 = vmatmul.mubr.f32.vlgmr.msra.gmra.mxu0 %v3099_v19  ;;  %2415 = vmatprep.subr.mxu0 %v2651_v2  ;;  %v1760_v19 = vld [vmem:[%s3486_s13 + $0x60] sm:$0xff]  ;;  %v1605_v15 = vand.u32 2147483647, %v1604_v6  ;;  %v1633_v6 = vld [vmem:[%s3485_s12 + $0x28] sm:$0xff] }
 0x1f7   : > { %2416 = vmatpush3.msra.mxu0 %v1763_v46  ;;  %2447 = vmatprep.mubr.msk.f32.mxu0 %vm2653_vm0, %v2651_v2 }
 0x1f8   : > { %2417 = vmatprep.subr.mxu0 %v2651_v2  ;;  %v1608_v49 = vmul.f32 %v1607_v14, %v1605_v15  ;;  %2407 = vmatpush3.msra.mxu1 %v1438_v44  ;;  %v1632_v14 = vld [vmem:[%s3485_s12 + $0x20] sm:$0xff]  ;;  %v1631_v15 = vld [vmem:[%s3485_s12 + $0x18] sm:$0xff] }
 0x1f9   : > { %2418 = vmatpush3.msra.mxu0 %v1762_v48  ;;  %2408 = vmatprep.subr.mxu1 %v2651_v2 }
 0x1fa   : > { %2419 = vmatprep.subr.mxu0 %v2651_v2  ;;  %v1609_v51 = vxor.u32 2147483648, %v1608_v49 }
 0x1fb   : > { %2420 = vmatpush3.msra.mxu0 %v1761_v52 }
 0x1fc   : > { %2421 = vmatprep.subr.mxu0 %v2651_v2  ;;  %v1610_v54 = vsel %vm1527_vm11, %v1609_v51, %v1608_v49  ;;  %v1630_v49 = vld [vmem:[%s3485_s12 + $0x10] sm:$0xff]  ;;  %v1628_v51 = vld [vmem:[%s3485_s12] sm:$0xff] }
 0x1fd   : > { %2422 = vmatpush3.msra.mxu0 %v1760_v19  ;;  %v1613_v57 = vsel %vm3260_vm12, %v3124_v35, %v1610_v54  ;;  %v1437_v35 = vld [vmem:[%s3483_s10 + $0x8] sm:$0xff]  ;;  %v1922_v54 = vld [vmem:[%s3488_s15 + $0x18] sm:$0xff] }
 0x1fe   : > { %2423 = vmatprep.subr.mxu0 %v2651_v2  ;;  %2576 = vcosq.f32 %v1613_v57  ;;  %2409 = vmatpush3.msra.mxu1 %v1437_v35 }
 0x1ff   : > { %2424 = vmatpush3.msra.mxu0 %v1759_v58  ;;  %2578 = vsinq.f32 %v1613_v57  ;;  %2410 = vmatprep.subr.mxu1 %v2651_v2  ;;  %v1921_v57 = vld [vmem:[%s3488_s15 + $0x10] sm:$0xff] }
 0x200   : > { %2425 = vmatprep.subr.mxu0 %v2651_v2  ;;  %2411 = vmatpush3.msra.mxu1 %v1436_v45 }
 0x201   : > { %2426 = vmatpush3.msra.mxu0 %v1758_v61  ;;  %2450 = vmatprep.subr.mxu1 %v2651_v2 }
 0x202   : > { %2427 = vmatprep.subr.mxu0 %v2651_v2 }
 0x203   : > { %2428 = vmatpush3.msra.mxu0 %v1757_v0  ;;  %v1643_v0 = vld [vmem:[%s3485_s12 + $0x78] sm:$0xff] }
 0x204   : > { %2429 = vmatprep.subr.mxu0 %v2651_v2 }
 0x205   : > { %2430 = vmatpush3.msra.mxu0 %v1756_v60  ;;  %v1920_v60 = vld [vmem:[%s3488_s15 + $0x8] sm:$0xff] }
 0x206   : > { %2431 = vmatprep.subr.mxu0 %v2651_v2 }
 0x207   : > { %2432 = vmatpush3.msra.mxu0 %v1755_v36  ;;  %v1919_v36 = vld [vmem:[%s3488_s15] sm:$0xff] }
 0x208   : > { %2433 = vmatprep.subr.mxu0 %v2651_v2 }
 0x209   : > { %2434 = vmatpush3.msra.mxu0 %v1754_v17 }
 0x20a   : > { %2435 = vmatprep.subr.mxu0 %v2651_v2 }
 0x20b   : > { %2436 = vmatpush3.msra.mxu0 %v1753_v38  ;;  %v2577_v25 = vpop.eup %2576 }
 0x20c   : > { %2437 = vmatprep.subr.mxu0 %v2651_v2  ;;  %v2579_v26 = vpop.eup %2578  ;;  %v1624_v28 = vxor.u32 2147483648, %v2577_v25 }
 0x20d   : > { %2438 = vmatpush3.msra.mxu0 %v1752_v55  ;;  %v1621_v29 = vxor.u32 2147483648, %v2579_v26 }
 0x20e   : > { %2439 = vmatprep.subr.mxu0 %v2651_v2  ;;  %v1745_v31 = vsel %vm1743_vm13, %v1624_v28, %v2579_v26  ;;  %v1625_v39 = vsel %vm1623_vm4, %v1624_v28, %v2579_v26  ;;  %v2130_v28 = vld [vmem:[%s3489_s16] ss:$0 sm:$0xff] }
 0x20f   : > { %2440 = vmatpush3.msra.mxu0 %v1751_v22  ;;  %v1742_v32 = vsel %vm1740_vm14, %v2577_v25, %v1621_v29  ;;  %v1622_v37 = vsel %vm1620_vm2, %v2577_v25, %v1621_v29 }
 0x210   : > { %2441 = vmatprep.subr.mxu0 %v2651_v2  ;;  %v1746_v34 = vsel %vm1739_vm15, %v1742_v32, %v1745_v31  ;;  %v1626_v40 = vsel %vm1619_vm5, %v1622_v37, %v1625_v39  ;;  %v2106_v32 = vld [vmem:[%s3479_s6] ss:$0 sm:$0xff] }
 0x211   : > { %2442 = vmatpush3.msra.mxu0 %v1750_v23  ;;  %v1747_v1 = vsel %vm1617_vm1, nan, %v1746_v34  ;;  %v3312_v41 = vsel %vm1617_vm1, nan, %v1626_v40 }
 0x212   : > { %2443 = vmatprep.subr.mxu0 %v2651_v2 }
 0x213   : > { %2444 = vmatpush3.msra.mxu0 %v1749_v27 }
 0x214   : > { %2445 = vmatprep.subr.mxu0 %v2651_v2 }
 0x215   : > { %2446 = vmatpush3.msra.mxu0 %v1748_v30 }
 0x216   : > { %2448 = vmatmul.mubr.f32.vlgmr.msra.gmra.mxu0 %v1747_v1  ;;  %2485 = vmatprep.subr.mxu0 %v2651_v2 }
 0x217   : > { %2493 = vmatprep.mubr.msk.f32.mxu0 %vm2653_vm0, %v2651_v2  ;;  %2486 = vmatpush3.msra.mxu0 %v1922_v54 }
 0x218   : > { %2487 = vmatprep.subr.mxu0 %v2651_v2 }
 0x219   : > { %2488 = vmatpush3.msra.mxu0 %v1921_v57 }
 0x21a   : > { %2489 = vmatprep.subr.mxu0 %v2651_v2 }
 0x21b   : > { %2490 = vmatpush3.msra.mxu0 %v1920_v60 }
 0x21c   : > { %2491 = vmatprep.subr.mxu0 %v2651_v2 }
 0x21d   : > { %2492 = vmatpush3.msra.mxu0 %v1919_v36 }
 0x296   : > { %v3330_v46 = vpop.f32.mrf.mxu0 }
 0x297   : > { %v1034_v34 = vadd.f32 %v2106_v32, %v3330_v46 }
 0x298   : > { %v2333_v47 = vpop.f32.mrf.mxu0 }
 0x2b6   : > { %v1417_v48 = vpop.f32.mrf.mxu0 }
 0x2b7   : > { %v1418_v52 = vadd.f32 %v1417_v48, %v3189_v24  ;;  %v1641_v24 = vld [vmem:[%s3485_s12 + $0x68] sm:$0xff] }
 0x2b8   : > { %v2403_v53 = vpop.f32.mrf.mxu0 }
 0x2b9   : > { %v1428_v19 = vadd.f32 %v2116_v50, %v1418_v52 }
 0x2bb   : > { %v2117_v56 = vmul.f32 -1.442695, %v1428_v19 }
 0x2bd   : > { %2580 = vpow2.f32 %v2117_v56 }
 0x2ca   : > { %v2581_v58 = vpop.eup %2580 }
 0x2cb   : > { %v1432_v59 = vadd.f32 1.0, %v2581_v58 }
 0x2cd   : > { %2582 = vrcp.f32 %v1432_v59 }
 0x2d6   : > { %v1830_v10 = vpop.f32.mrf.mxu0 }
 0x2d8   : > { %v2449_v12 = vpop.f32.mrf.mxu0 }
 0x2da   : > { %v2583_v61 = vpop.eup %2582 }
 0x2db   : > { %v1435_v62 = vmul.f32 %v2583_v61, %v1428_v19 }
 0x2dd   : > { %2413 = vmatmul.mubr.msk.f32.vlgmr.msra.gmra.mxu1 %vm963_vm3, %v1435_v62 }
 0x2de   : > { %2451 = vmatpush3.msra.mxu1 %v1643_v0  ;;  %2482 = vmatprep.mubr.msk.f32.mxu1 %vm2653_vm0, %v2651_v2  ;;  %vm2012_vm0 = vcmask 523264  }
 0x2df   : > { %2452 = vmatprep.subr.mxu1 %v2651_v2 }
 0x2e0   : > { %2453 = vmatpush3.msra.mxu1 %v1642_v3 }
 0x2e1   : > { %2454 = vmatprep.subr.mxu1 %v2651_v2 }
 0x2e2   : > { %2455 = vmatpush3.msra.mxu1 %v1641_v24 }
 0x2e3   : > { %2456 = vmatprep.subr.mxu1 %v2651_v2 }
 0x2e4   : > { %2457 = vmatpush3.msra.mxu1 %v1640_v4 }
 0x2e5   : > { %2458 = vmatprep.subr.mxu1 %v2651_v2 }
 0x2e6   : > { %2459 = vmatpush3.msra.mxu1 %v1639_v5 }
 0x2e7   : > { %2460 = vmatprep.subr.mxu1 %v2651_v2 }
 0x2e8   : > { %2461 = vmatpush3.msra.mxu1 %v1638_v7 }
 0x2e9   : > { %2462 = vmatprep.subr.mxu1 %v2651_v2 }
 0x2ea   : > { %2463 = vmatpush3.msra.mxu1 %v1637_v8 }
 0x2eb   : > { %2464 = vmatprep.subr.mxu1 %v2651_v2 }
 0x2ec   : > { %2465 = vmatpush3.msra.mxu1 %v1636_v9 }
 0x2ed   : > { %2466 = vmatprep.subr.mxu1 %v2651_v2 }
 0x2ee   : > { %2467 = vmatpush3.msra.mxu1 %v1635_v11 }
 0x2ef   : > { %2468 = vmatprep.subr.mxu1 %v2651_v2 }
 0x2f0   : > { %2469 = vmatpush3.msra.mxu1 %v1634_v13 }
 0x2f1   : > { %2470 = vmatprep.subr.mxu1 %v2651_v2 }
 0x2f2   : > { %2471 = vmatpush3.msra.mxu1 %v1633_v6 }
 0x2f3   : > { %2472 = vmatprep.subr.mxu1 %v2651_v2 }
 0x2f4   : > { %2473 = vmatpush3.msra.mxu1 %v1632_v14 }
 0x2f5   : > { %2474 = vmatprep.subr.mxu1 %v2651_v2 }
 0x2f6   : > { %2475 = vmatpush3.msra.mxu1 %v1631_v15 }
 0x2f7   : > { %2476 = vmatprep.subr.mxu1 %v2651_v2 }
 0x2f8   : > { %2477 = vmatpush3.msra.mxu1 %v1630_v49 }
 0x2f9   : > { %2478 = vmatprep.subr.mxu1 %v2651_v2 }
 0x2fa   : > { %2479 = vmatpush3.msra.mxu1 %v1629_v16 }
 0x2fb   : > { %2480 = vmatprep.subr.mxu1 %v2651_v2 }
 0x2fc   : > { %2481 = vmatpush3.msra.mxu1 %v1628_v51 }
 0x2fd   : > { %2483 = vmatmul.mubr.f32.vlgmr.msra.gmra.mxu1 %v3312_v41 }
 0x39d   : > { %v1516_v17 = vpop.f32.mrf.mxu1 }
 0x39e   : > { %v1517_v18 = vadd.f32 %v2118_v63, %v1516_v17 }
 0x39f   : > { %v2414_v38 = vpop.f32.mrf.mxu1 }
 0x3a0   : > { %2004 = vrot.lane.b32.xlu1 %v1517_v18, %s2661_s22  ;;  %s2133_s22 = sshll.u32 %s2775_s28, 7  ;;  %s2663_s28 = smov [#allocation2]  }
 0x3a1   : > { %s2592_s30 = sshll.u32 %s2663_s28, 4  ;;  %s2593_s30 = int_to_ptr.vmem [resolvable:$false] %s2592_s30 }
 0x3a2   : > { %s2594_s2 = scalar_lea.vmem %s2593_s30, 256  ;;  %p2595_p0 = scmp.lt.s32.totalorder %s2031_s29, %s2593_s30 }
 0x3a3   : > { %p2596_p1 = scmp.lt.s32.totalorder %s2594_s2, %s2588_s21 }
 0x3a5   : > { %p2597_p2 = por %p2596_p1, %p2595_p0 }
 0x3a7   : > { %p2598_p3 = pnand %p2597_p2, %p2591_p13 }
 0x3bd   : > { %v1900_v43 = vpop.f32.mrf.mxu1 }
 0x3be   : > { %v1901_v2 = vadd.f32 %v1900_v43, %v1830_v10 }
 0x3bf   : > { %v2484_v55 = vpop.f32.mrf.mxu1 }
 0x3c0   : > { %v1911_v21 = vadd.f32 %v2128_v20, %v1901_v2 }
 0x3c2   : > { %v2129_v22 = vmul.f32 -1.442695, %v1911_v21 }
 0x3c4   : > { %2584 = vpow2.f32 %v2129_v22 }
 0x3d1   : > { %v2585_v23 = vpop.eup %2584 }
 0x3d2   : > { %v1915_v25 = vadd.f32 1.0, %v2585_v23 }
 0x3d4   : > { %2586 = vrcp.f32 %v1915_v25 }
 0x3e1   : > { %v2587_v26 = vpop.eup %2586 }
 0x3e2   : > { %v1918_v27 = vmul.f32 %v2587_v26, %v1911_v21 }
 0x3e4   : > { %2494 = vmatmul.mubr.msk.f32.vlgmr.msra.gmra.mxu0 %vm963_vm3, %v1918_v27 }
 0x412   : > { %v2005_v33 = vpop.permute.xlu1 %2004 }
 0x413   : > { %v2011_v1 = vsel %vm963_vm3, %v1034_v34, %v2005_v33 }
 0x4a4   : > { %v1999_v29 = vpop.f32.mrf.mxu0 }
 0x4a5   : > { %v2000_v30 = vadd.f32 %v2130_v28, %v1999_v29 }
 0x4a6   : > { %v2495_v31 = vpop.f32.mrf.mxu0 }
 0x4a7   : > { %2008 = vrot.lane.b32.xlu1 %v2000_v30, %s2662_s19  ;;  %s3438_s19 = scalar_lea.hbm %s3490_s17, %s2133_s22 }
 0x519   : > { %v2009_v37 = vpop.permute.xlu1 %2008 }
 0x51a   : > { %v2013_v39 = vsel %vm2012_vm0, %v2011_v1, %v2009_v37 }
 0x51b   : > { %2015 = vst.msk [vmem:[%s539_s23] sm:$0xff] %vm2014_vm6, %v2013_v39 }
 0x51c   : > { %2601 = shalt.err (!%p2598_p3)
}
 0x51d   : > { %s2602_s22 = scalar_lea.hbm %s3438_s19, 128  ;;  %s2606_s26 = scalar_lea.hbm %s3490_s17, 256 }
 0x51e   : > { %p2603_p4 = scmp.ne.s32.totalorder %s3438_s19, %s2602_s22  ;;  %p2607_p9 = scmp.lt.s32.totalorder %s3438_s19, %s3490_s17 }
 0x51f   : > { %p2608_p10 = scmp.lt.s32.totalorder %s2606_s26, %s2602_s22 }
 0x520   : > { %p2604_p7 = pnand %p2603_p4, %p2792_p5 }
 0x521   : > { %p2609_p11 = por %p2608_p10, %p2607_p9 }
 0x522   : > { %p2605_p8 = pneg %p2604_p7 }
 0x524   : > { %p2610_p12 = pnand %p2609_p11, %p2605_p8 }
 0x526   : > { %2613 = shalt.err (!%p2610_p12)
}
 0x527   : > { %2508 = dma.vmem_to_hbm [thread:$0]  (%p2792_p5), %s2031_s29, 128, %s3438_s19, %s2017_s18  }
 0x528 PF: > { %p2514_p13 = scmp.ge.s32.totalorder %s2648_s27, 2  ;;  %s2042_s21 = sand.u32 1, %s2636_s24  }
 0x529   : > { %s2043_s30 = scalar_lea.sflag [#allocation3], %s2042_s21 }
 0x52a   : > { %p2511_p0 = pnand %p2514_p13, %p2796_p6 }
 0x52c   : > { %p2512_p1 = pneg %p2511_p0 }
 0x52e   : > { %2631 = dma.done.wait (%p2512_p1), %s2043_s30, 128  }
 0x52f   : > { %2633 = vsyncadd (%p2512_p1), %s2043_s30, 4294967168  ;;  %s3510_s27 = sld [smem:[#allocation6_spill]]  ;;  %s3513_s24 = smov %s2640_s25 }
 0x530   : > { %s3511_s22 = sld [smem:[#allocation5_spill]] }
 0x531   : > { %s3512_s26 = sld [smem:[#allocation7_spill]] }
 0x535   : > { %p27_p2 = scmp.ge.s32.totalorder %s3510_s27, 4  }
 0x536   : > { %s3514_s25 = smov %s3511_s22 }
 0x537   :  { %29 = sbr.rel (!%p27_p2) target bundleno = 7 (0x7), region = 123 }
 0x53c   :  { %2048 = vsyncpa [#allocation3], 1 }
 0x53d   :  { %2050 = vsyncpa [#allocation3 + $0x1], 1 }

</bundles_post_ra>
